<compile_context>
chip_gen: v7x
topology: tpu7x:2x2x1
jax: 0.10.0
libtpu: 0.0.40
codegen_flags: <defaults>
</compile_context>

<pallas_src>
import math
from functools import partial

import jax
import jax.numpy as jnp
from jax.experimental import pallas as pl
from jax.experimental.pallas import tpu as pltpu

# Conservative tile targets that fit double-buffered in VMEM on v5e/v6e (128 MiB
# physical) and v7x (64 MiB physical).  Scoped VMEM limit is raised explicitly
# (defaults are 16/32/32 MiB) while leaving headroom on v7x.
VMEM_LIMIT = 48 * 1024 * 1024
TM_TARGET = 512        # GEMM rows per tile (sublane axis)
TN_TARGET = 512        # GEMM output columns per tile (lane axis)
TK_TARGET = 1024       # GEMM reduction depth per tile (full K=768 for bert-base)


def _pick_tile(dim, target, base):
    """Largest multiple of `base` dividing `dim` that is <= target, else full dim."""
    if dim <= target or dim % base != 0:
        return dim
    t = (target // base) * base
    while t >= base:
        if dim % t == 0:
            return t
        t -= base
    return dim


# ------------------------- Pallas kernels -------------------------

def _matmul_bias_kernel(x_ref, w_ref, b_ref, o_ref, acc_ref, *, activation):
    """Tiled GEMM with f32 accumulator; optional GELU epilogue."""
    k = pl.program_id(2)

    @pl.when(k == 0)
    def _init():
        acc_ref[...] = jnp.zeros_like(acc_ref)

    acc_ref[...] += jnp.dot(x_ref[...], w_ref[...],
                            preferred_element_type=jnp.float32)

    @pl.when(k == pl.num_programs(2) - 1)
    def _finalize():
        y = acc_ref[...] + b_ref[...]
        if activation == "gelu":
            # tanh-approx GELU (original BERT formulation); erf variant differs < 1e-3.
            c = math.sqrt(2.0 / math.pi)
            y = 0.5 * y * (1.0 + jnp.tanh(c * (y + 0.044715 * y * y * y)))
        o_ref[...] = y.astype(o_ref.dtype)


def matmul_bias(x, w, b, activation=None, out_dtype=jnp.bfloat16):
    """x: [M, K] bf16, w: [K, N] bf16, b: [N] f32 -> [M, N]."""
    M, K = x.shape
    K2, N = w.shape
    assert K == K2
    TM = _pick_tile(M, TM_TARGET, 8)
    TN = _pick_tile(N, TN_TARGET, 128)
    TK = _pick_tile(K, TK_TARGET, 128)
    grid = (M // TM, N // TN, K // TK)
    return pl.pallas_call(
        partial(_matmul_bias_kernel, activation=activation),
        out_shape=jax.ShapeDtypeStruct((M, N), out_dtype),
        grid=grid,
        in_specs=[pl.BlockSpec((TM, TK), lambda i, j, k: (i, k)),
                  pl.BlockSpec((TK, TN), lambda i, j, k: (k, j)),
                  pl.BlockSpec((1, TN), lambda i, j, k: (0, j))],
        out_specs=pl.BlockSpec((TM, TN), lambda i, j, k: (i, j)),
        scratch_shapes=[pltpu.VMEM((TM, TN), jnp.float32)],
        compiler_params=pltpu.CompilerParams(
            dimension_semantics=("parallel", "parallel", "arbitrary"),
            vmem_limit_bytes=VMEM_LIMIT),
    )(x, w, b.reshape(1, N))


def _matmul_res_ln_kernel(x_ref, w_ref, b_ref, res_ref, g_ref, bb_ref,
                          o_ref, acc_ref, *, eps):
    """Tiled GEMM with fused bias + residual-add + LayerNorm epilogue.

    Requires the full output hidden dim (N) in one block so the LayerNorm row
    statistics are complete at finalize time.
    """
    k = pl.program_id(1)

    @pl.when(k == 0)
    def _init():
        acc_ref[...] = jnp.zeros_like(acc_ref)

    acc_ref[...] += jnp.dot(x_ref[...], w_ref[...],
                            preferred_element_type=jnp.float32)

    @pl.when(k == pl.num_programs(1) - 1)
    def _finalize():
        y = acc_ref[...] + b_ref[...] + res_ref[...].astype(jnp.float32)
        mean = jnp.mean(y, axis=-1, keepdims=True)
        var = jnp.mean(jnp.square(y - mean), axis=-1, keepdims=True)
        inv = jax.lax.rsqrt(var + eps)
        o_ref[...] = ((y - mean) * inv * g_ref[...] + bb_ref[...]).astype(o_ref.dtype)


def matmul_bias_res_ln(x, w, b, res, gamma, beta, out_dtype=jnp.bfloat16):
    """LayerNorm(x @ w + b + res) with f32 math; x/w/res bf16, b/gamma/beta f32."""
    M, K = x.shape
    K2, N = w.shape
    assert K == K2
    TM = _pick_tile(M, TM_TARGET, 8)
    TK = _pick_tile(K, TK_TARGET, 128)
    grid = (M // TM, K // TK)
    return pl.pallas_call(
        partial(_matmul_res_ln_kernel, eps=1e-12),
        out_shape=jax.ShapeDtypeStruct((M, N), out_dtype),
        grid=grid,
        in_specs=[pl.BlockSpec((TM, TK), lambda i, k: (i, k)),
                  pl.BlockSpec((TK, N), lambda i, k: (k, 0)),
                  pl.BlockSpec((1, N), lambda i, k: (0, 0)),
                  pl.BlockSpec((TM, N), lambda i, k: (i, 0)),
                  pl.BlockSpec((1, N), lambda i, k: (0, 0)),
                  pl.BlockSpec((1, N), lambda i, k: (0, 0))],
        out_specs=pl.BlockSpec((TM, N), lambda i, k: (i, 0)),
        scratch_shapes=[pltpu.VMEM((TM, N), jnp.float32)],
        compiler_params=pltpu.CompilerParams(
            dimension_semantics=("parallel", "arbitrary"),
            vmem_limit_bytes=VMEM_LIMIT),
    )(x, w, b.reshape(1, N), res, gamma.reshape(1, N), beta.reshape(1, N))


def _layernorm_kernel(x_ref, g_ref, b_ref, o_ref, *, eps):
    y = x_ref[...].astype(jnp.float32)
    mean = jnp.mean(y, axis=-1, keepdims=True)
    var = jnp.mean(jnp.square(y - mean), axis=-1, keepdims=True)
    inv = jax.lax.rsqrt(var + eps)
    o_ref[...] = ((y - mean) * inv * g_ref[...] + b_ref[...]).astype(o_ref.dtype)


def layernorm(x, gamma, beta, out_dtype=jnp.bfloat16):
    """Row-tiled LayerNorm (used only for the embedding LN)."""
    M, H = x.shape
    TM = _pick_tile(M, 1024, 8)
    grid = (M // TM,)
    return pl.pallas_call(
        partial(_layernorm_kernel, eps=1e-12),
        out_shape=jax.ShapeDtypeStruct((M, H), out_dtype),
        grid=grid,
        in_specs=[pl.BlockSpec((TM, H), lambda i: (i, 0)),
                  pl.BlockSpec((1, H), lambda i: (0, 0)),
                  pl.BlockSpec((1, H), lambda i: (0, 0))],
        out_specs=pl.BlockSpec((TM, H), lambda i: (i, 0)),
        compiler_params=pltpu.CompilerParams(
            dimension_semantics=("parallel",),
            vmem_limit_bytes=VMEM_LIMIT),
    )(x, gamma.reshape(1, H), beta.reshape(1, H))


def _attention_kernel(qkv_ref, bias_ref, o_ref, *, num_heads, scale):
    """One batch element per grid step; all heads processed inside the kernel.

    qkv_ref:  (1, S, 3H) bf16 -- fused Q|K|V projections
    bias_ref: (1, 1, S)  f32  -- precomputed additive key mask (1-mask)*(-10000)
    o_ref:    (1, S, H)  bf16 -- context written directly in [B, S, H] layout
    """
    S = qkv_ref.shape[1]
    H = qkv_ref.shape[2] // 3
    dH = H // num_heads
    qkv = qkv_ref[0]            # (S, 3H) bf16
    bias = bias_ref[0]          # (1, S)  f32

    for h in range(num_heads):  # static unroll over heads
        q = qkv[:, h * dH:(h + 1) * dH]                 # (S, dH)
        k = qkv[:, H + h * dH:H + (h + 1) * dH]         # (S, dH)
        v = qkv[:, 2 * H + h * dH:2 * H + (h + 1) * dH]  # (S, dH)
        # Contract last axes directly (no k.T relayout before the MXU).
        scores = jax.lax.dot_general(
            q, k, (((1,), (1,)), ((), ())),
            preferred_element_type=jnp.float32) * scale  # (S, S) f32
        scores = scores + bias                           # BERT additive key mask
        scores = scores - jnp.max(scores, axis=-1, keepdims=True)
        p = jnp.exp(scores)
        denom = jnp.sum(p, axis=-1, keepdims=True)
        p = p * pl.reciprocal(denom, approx=True)        # EUP divide
        ctx = jnp.dot(p.astype(v.dtype), v,
                      preferred_element_type=jnp.float32)  # (S, dH) f32
        o_ref[0, :, h * dH:(h + 1) * dH] = ctx.astype(o_ref.dtype)


def multihead_attention(qkv, neg_bias, num_heads):
    """qkv: [B, S, 3H] bf16, neg_bias: [B, 1, S] f32 -> [B, S, H] bf16."""
    B, S, H3 = qkv.shape
    H = H3 // 3
    dH = H // num_heads
    return pl.pallas_call(
        partial(_attention_kernel, num_heads=num_heads,
                scale=1.0 / math.sqrt(dH)),
        out_shape=jax.ShapeDtypeStruct((B, S, H), qkv.dtype),
        grid=(B,),
        in_specs=[pl.BlockSpec((1, S, H3), lambda b: (b, 0, 0)),
                  pl.BlockSpec((1, 1, S), lambda b: (b, 0, 0))],
        out_specs=pl.BlockSpec((1, S, H), lambda b: (b, 0, 0)),
        compiler_params=pltpu.CompilerParams(
            dimension_semantics=("parallel",),
            vmem_limit_bytes=VMEM_LIMIT),
    )(qkv, neg_bias)


# ------------------------- model glue (plain JAX) -------------------------

def _init(key, shape, scale=0.02, dtype=jnp.float32):
    return (scale * jax.random.normal(key, shape, dtype=jnp.float32)).astype(dtype)


def init_bert_params(key, *, vocab_size, max_pos, hidden, num_layers,
                     num_heads, intermediate):
    keys = jax.random.split(key, 3 + num_layers)
    params = {
        # Embedding tables kept in f32 (they feed LayerNorm math, never the MXU).
        "word_emb": _init(keys[0], (vocab_size, hidden)),
        "pos_emb": _init(keys[1], (max_pos, hidden)),
        "type_emb": _init(keys[2], (2, hidden)),
        "emb_ln_g": jnp.ones((hidden,), jnp.float32),
        "emb_ln_b": jnp.zeros((hidden,), jnp.float32),
        "num_heads": num_heads,
        "layers": [],
    }
    for li in range(num_layers):
        lk = jax.random.split(keys[3 + li], 4)
        params["layers"].append({
            # GEMM weights in bf16 (MXU native); biases / LN params in f32.
            "wqkv": _init(lk[0], (hidden, 3 * hidden), dtype=jnp.bfloat16),
            "bqkv": jnp.zeros((3 * hidden,), jnp.float32),
            "wo": _init(lk[1], (hidden, hidden), dtype=jnp.bfloat16),
            "bo": jnp.zeros((hidden,), jnp.float32),
            "ln1_g": jnp.ones((hidden,), jnp.float32),
            "ln1_b": jnp.zeros((hidden,), jnp.float32),
            "w1": _init(lk[2], (hidden, intermediate), dtype=jnp.bfloat16),
            "b1": jnp.zeros((intermediate,), jnp.float32),
            "w2": _init(lk[3], (intermediate, hidden), dtype=jnp.bfloat16),
            "b2": jnp.zeros((hidden,), jnp.float32),
            "ln2_g": jnp.ones((hidden,), jnp.float32),
            "ln2_b": jnp.zeros((hidden,), jnp.float32),
        })
    return params


def encoder_layer(p, num_heads, x, neg_bias, B, S):
    """x: [B*S, H] bf16, neg_bias: [B, 1, S] f32 -> [B*S, H] bf16."""
    H = x.shape[1]

    # Fused Q|K|V projection: one GEMM, [B*S, 3H].
    qkv = matmul_bias(x, p["wqkv"], p["bqkv"])
    # [B*S, 3H] -> [B, S, 3H] is a free leading-dim reshape (no transpose).
    ctx = multihead_attention(qkv.reshape(B, S, 3 * H), neg_bias, num_heads)
    ctx = ctx.reshape(B * S, H)

    # Output projection with fused bias + residual + LayerNorm epilogue.
    x = matmul_bias_res_ln(ctx, p["wo"], p["bo"], x, p["ln1_g"], p["ln1_b"])

    # FFN: up-projection with GELU epilogue, down-projection with fused add&norm.
    h = matmul_bias(x, p["w1"], p["b1"], activation="gelu")
    x = matmul_bias_res_ln(h, p["w2"], p["b2"], x, p["ln2_g"], p["ln2_b"])
    return x


def bert_forward(params, token_ids):
    """token_ids: int32 [B, S] (0 = padding).
    Returns (bert_features [B, S, H] float32, attention_mask [B, S] float32)."""
    B, S = token_ids.shape
    H = params["word_emb"].shape[1]
    attention_mask = (token_ids > 0).astype(jnp.float32)
    # Hoisted additive key-mask bias, computed once for all layers/heads.
    neg_bias = ((1.0 - attention_mask) * (-10000.0)).reshape(B, 1, S)

    words = jnp.take(params["word_emb"], token_ids, axis=0)      # [B, S, H]
    pos = params["pos_emb"][:S][None, :, :]                      # [1, S, H]
    typ = params["type_emb"][0][None, None, :]                   # token_type_ids=None -> 0
    emb = (words + pos + typ).reshape(B * S, H)
    x = layernorm(emb, params["emb_ln_g"], params["emb_ln_b"])   # bf16 [B*S, H]

    for layer in params["layers"]:
        x = encoder_layer(layer, params["num_heads"], x, neg_bias, B, S)

    return x.astype(jnp.float32).reshape(B, S, H), attention_mask


# ------------------------- main -------------------------

if __name__ == "__main__":
    # Small bert-base-shaped config.
    VOCAB, MAX_POS = 64, 16
    HIDDEN, LAYERS, HEADS, INTERMEDIATE = 32, 2, 4, 64
    B, S = 2, 8

    key = jax.random.PRNGKey(0)
    k_tok, k_param = jax.random.split(key)

    params = init_bert_params(k_param, vocab_size=VOCAB, max_pos=MAX_POS,
                              hidden=HIDDEN, num_layers=LAYERS,
                              num_heads=HEADS, intermediate=INTERMEDIATE)

    # Deterministic "tokenized + padded" batch: sentence lengths 8 and 5, pad id 0.
    raw_ids = jax.random.randint(k_tok, (B, S), 1, VOCAB, dtype=jnp.int32)
    lengths = jnp.array([8, 5], dtype=jnp.int32)
    valid = jnp.arange(S, dtype=jnp.int32)[None, :] < lengths[:, None]
    token_ids = jnp.where(valid, raw_ids, 0)

    forward = jax.jit(lambda ids: bert_forward(params, ids))
    features, attn_mask = forward(token_ids)
    features = jax.block_until_ready(features)
    attn_mask = jax.block_until_ready(attn_mask)

    assert features.shape == (B, S, HIDDEN) and features.dtype == jnp.float32
    assert attn_mask.shape == (B, S)
    assert bool(jnp.all(jnp.isfinite(features)))
    print("KERNEL_OK")
</pallas_src>

<mosaic_0001>
module attributes {stable_mosaic.version = 11 : i64} {
  func.func @_layernorm_kernel(%arg0: i32, %arg1: memref<16x32xf32, #tpu.memory_space<vmem>>, %arg2: memref<1x32xf32, #tpu.memory_space<vmem>>, %arg3: memref<1x32xf32, #tpu.memory_space<vmem>>, %arg4: memref<16x32xbf16, #tpu.memory_space<vmem>>) attributes {dimension_semantics = [#tpu.dimension_semantics<parallel>], iteration_bounds = array<i64: 1>, scalar_prefetch = 0 : i64, scratch_operands = 0 : i64, tpu.core_type = #tpu.core_type<tc>, window_params = [{transform_indices = @transform_0, window_bounds = array<i64: 16, 32>}, {pipeline_mode = #tpu.pipeline_mode<synchronous>, transform_indices = @transform_1, window_bounds = array<i64: 1, 32>}, {pipeline_mode = #tpu.pipeline_mode<synchronous>, transform_indices = @transform_2, window_bounds = array<i64: 1, 32>}, {transform_indices = @transform_3, window_bounds = array<i64: 16, 32>}]} {
    %c0 = arith.constant 0 : index
    %c0_0 = arith.constant 0 : index
    %0 = vector.load %arg1[%c0, %c0_0] : memref<16x32xf32, #tpu.memory_space<vmem>>, vector<16x32xf32>
    %cst = arith.constant dense<0.000000e+00> : vector<16xf32>
    %1 = vector.multi_reduction <add>, %0, %cst [1] : vector<16x32xf32> to vector<16xf32>
    %2 = vector.shape_cast %1 : vector<16xf32> to vector<16x1xf32>
    %cst_1 = arith.constant 3.200000e+01 : f32
    %3 = vector.broadcast %cst_1 : f32 to vector<16x1xf32>
    %4 = arith.divf %2, %3 : vector<16x1xf32>
    %5 = vector.broadcast %4 : vector<16x1xf32> to vector<16x32xf32>
    %6 = arith.subf %0, %5 : vector<16x32xf32>
    %7 = arith.mulf %6, %6 : vector<16x32xf32>
    %cst_2 = arith.constant dense<0.000000e+00> : vector<16xf32>
    %8 = vector.multi_reduction <add>, %7, %cst_2 [1] : vector<16x32xf32> to vector<16xf32>
    %9 = vector.shape_cast %8 : vector<16xf32> to vector<16x1xf32>
    %cst_3 = arith.constant 3.200000e+01 : f32
    %10 = vector.broadcast %cst_3 : f32 to vector<16x1xf32>
    %11 = arith.divf %9, %10 : vector<16x1xf32>
    %cst_4 = arith.constant 9.99999996E-13 : f32
    %12 = vector.broadcast %cst_4 : f32 to vector<16x1xf32>
    %13 = arith.addf %11, %12 : vector<16x1xf32>
    %14 = math.rsqrt %13 : vector<16x1xf32>
    %15 = vector.broadcast %4 : vector<16x1xf32> to vector<16x32xf32>
    %16 = arith.subf %0, %15 : vector<16x32xf32>
    %17 = vector.broadcast %14 : vector<16x1xf32> to vector<16x32xf32>
    %18 = arith.mulf %16, %17 : vector<16x32xf32>
    %c0_5 = arith.constant 0 : index
    %c0_6 = arith.constant 0 : index
    %19 = vector.load %arg2[%c0_5, %c0_6] : memref<1x32xf32, #tpu.memory_space<vmem>>, vector<1x32xf32>
    %20 = vector.broadcast %19 : vector<1x32xf32> to vector<16x32xf32>
    %21 = arith.mulf %18, %20 : vector<16x32xf32>
    %c0_7 = arith.constant 0 : index
    %c0_8 = arith.constant 0 : index
    %22 = vector.load %arg3[%c0_7, %c0_8] : memref<1x32xf32, #tpu.memory_space<vmem>>, vector<1x32xf32>
    %23 = vector.broadcast %22 : vector<1x32xf32> to vector<16x32xf32>
    %24 = arith.addf %21, %23 : vector<16x32xf32>
    %25 = arith.truncf %24 : vector<16x32xf32> to vector<16x32xbf16>
    %c0_9 = arith.constant 0 : index
    %c0_10 = arith.constant 0 : index
    %26 = vector.load %arg4[%c0_9, %c0_10] : memref<16x32xbf16, #tpu.memory_space<vmem>>, vector<16x32xbf16>
    tpu.vector_store %arg4[%c0_9, %c0_10], %25 {strides = array<i32>} : memref<16x32xbf16, #tpu.memory_space<vmem>>, vector<16x32xbf16>,
    return
  }
  func.func @transform_0(%arg0: i32) -> (i32, i32) {
    %c0_i32 = arith.constant 0 : i32
    %c0_i32_0 = arith.constant 0 : i32
    return %arg0, %c0_i32 : i32, i32
  }
  func.func @transform_1(%arg0: i32) -> (i32, i32) {
    %c0_i32 = arith.constant 0 : i32
    %c0_i32_0 = arith.constant 0 : i32
    %c0_i32_1 = arith.constant 0 : i32
    return %c0_i32, %c0_i32_0 : i32, i32
  }
  func.func @transform_2(%arg0: i32) -> (i32, i32) {
    %c0_i32 = arith.constant 0 : i32
    %c0_i32_0 = arith.constant 0 : i32
    %c0_i32_1 = arith.constant 0 : i32
    return %c0_i32, %c0_i32_0 : i32, i32
  }
  func.func @transform_3(%arg0: i32) -> (i32, i32) {
    %c0_i32 = arith.constant 0 : i32
    %c0_i32_0 = arith.constant 0 : i32
    return %arg0, %c0_i32 : i32, i32
  }
}

module attributes {stable_mosaic.version = 11 : i64} {
  func.func @_matmul_bias_kernel(%arg0: i32, %arg1: i32, %arg2: i32, %arg3: memref<16x32xbf16, #tpu.memory_space<vmem>>, %arg4: memref<32x96xbf16, #tpu.memory_space<vmem>>, %arg5: memref<1x96xf32, #tpu.memory_space<vmem>>, %arg6: memref<16x96xbf16, #tpu.memory_space<vmem>>, %arg7: memref<16x96xf32, #tpu.memory_space<vmem>>) attributes {dimension_semantics = [#tpu.dimension_semantics<parallel>, #tpu.dimension_semantics<parallel>, #tpu.dimension_semantics<arbitrary>], iteration_bounds = array<i64: 1, 1, 1>, scalar_prefetch = 0 : i64, scratch_operands = 1 : i64, tpu.core_type = #tpu.core_type<tc>, window_params = [{transform_indices = @transform_0, window_bounds = array<i64: 16, 32>}, {transform_indices = @transform_1, window_bounds = array<i64: 32, 96>}, {transform_indices = @transform_2, window_bounds = array<i64: 1, 96>}, {transform_indices = @transform_3, window_bounds = array<i64: 16, 96>}]} {
    %c0_i32 = arith.constant 0 : i32
    %0 = arith.cmpi eq, %arg2, %c0_i32 : i32
    %1 = arith.extui %0 : i1 to i32
    %c0_i32_0 = arith.constant 0 : i32
    %2 = arith.cmpi ne, %1, %c0_i32_0 : i32
    scf.if %2 {
      %cst_10 = arith.constant 0.000000e+00 : f32
      %12 = vector.broadcast %cst_10 : f32 to vector<16x96xf32>
      %c0_11 = arith.constant 0 : index
      %c0_12 = arith.constant 0 : index
      %13 = vector.load %arg7[%c0_11, %c0_12] : memref<16x96xf32, #tpu.memory_space<vmem>>, vector<16x96xf32>
      tpu.vector_store %arg7[%c0_11, %c0_12], %12 {strides = array<i32>} : memref<16x96xf32, #tpu.memory_space<vmem>>, vector<16x96xf32>,
    } else {
    }
    %c0 = arith.constant 0 : index
    %c0_1 = arith.constant 0 : index
    %3 = vector.load %arg7[%c0, %c0_1] : memref<16x96xf32, #tpu.memory_space<vmem>>, vector<16x96xf32>
    %c0_2 = arith.constant 0 : index
    %c0_3 = arith.constant 0 : index
    %4 = vector.load %arg3[%c0_2, %c0_3] : memref<16x32xbf16, #tpu.memory_space<vmem>>, vector<16x32xbf16>
    %c0_4 = arith.constant 0 : index
    %c0_5 = arith.constant 0 : index
    %5 = vector.load %arg4[%c0_4, %c0_5] : memref<32x96xbf16, #tpu.memory_space<vmem>>, vector<32x96xbf16>
    %cst = arith.constant dense<0.000000e+00> : vector<16x96xf32>
    %6 = tpu.matmul %4, %5, %cst {dimension_numbers = #tpu.dot_dimension_numbers<[1], [0], [0], [1], [0, 0, 1, 1], [], []>} : vector<16x32xbf16>, vector<32x96xbf16>, vector<16x96xf32> -> vector<16x96xf32>
    %7 = arith.addf %3, %6 : vector<16x96xf32>
    %c0_6 = arith.constant 0 : index
    %c0_7 = arith.constant 0 : index
    %8 = vector.load %arg7[%c0_6, %c0_7] : memref<16x96xf32, #tpu.memory_space<vmem>>, vector<16x96xf32>
    tpu.vector_store %arg7[%c0_6, %c0_7], %7 {strides = array<i32>} : memref<16x96xf32, #tpu.memory_space<vmem>>, vector<16x96xf32>,
    %c0_i32_8 = arith.constant 0 : i32
    %9 = arith.cmpi eq, %arg2, %c0_i32_8 : i32
    %10 = arith.extui %9 : i1 to i32
    %c0_i32_9 = arith.constant 0 : i32
    %11 = arith.cmpi ne, %10, %c0_i32_9 : i32
    scf.if %11 {
      %c0_10 = arith.constant 0 : index
      %c0_11 = arith.constant 0 : index
      %12 = vector.load %arg7[%c0_10, %c0_11] : memref<16x96xf32, #tpu.memory_space<vmem>>, vector<16x96xf32>
      %c0_12 = arith.constant 0 : index
      %c0_13 = arith.constant 0 : index
      %13 = vector.load %arg5[%c0_12, %c0_13] : memref<1x96xf32, #tpu.memory_space<vmem>>, vector<1x96xf32>
      %14 = vector.broadcast %13 : vector<1x96xf32> to vector<16x96xf32>
      %15 = arith.addf %12, %14 : vector<16x96xf32>
      %16 = arith.truncf %15 : vector<16x96xf32> to vector<16x96xbf16>
      %c0_14 = arith.constant 0 : index
      %c0_15 = arith.constant 0 : index
      %17 = vector.load %arg6[%c0_14, %c0_15] : memref<16x96xbf16, #tpu.memory_space<vmem>>, vector<16x96xbf16>
      tpu.vector_store %arg6[%c0_14, %c0_15], %16 {strides = array<i32>} : memref<16x96xbf16, #tpu.memory_space<vmem>>, vector<16x96xbf16>,
    } else {
    }
    return
  }
  func.func @transform_0(%arg0: i32, %arg1: i32, %arg2: i32) -> (i32, i32) {
    %c0_i32 = arith.constant 0 : i32
    return %arg0, %arg2 : i32, i32
  }
  func.func @transform_1(%arg0: i32, %arg1: i32, %arg2: i32) -> (i32, i32) {
    %c0_i32 = arith.constant 0 : i32
    return %arg2, %arg1 : i32, i32
  }
  func.func @transform_2(%arg0: i32, %arg1: i32, %arg2: i32) -> (i32, i32) {
    %c0_i32 = arith.constant 0 : i32
    %c0_i32_0 = arith.constant 0 : i32
    return %c0_i32, %arg1 : i32, i32
  }
  func.func @transform_3(%arg0: i32, %arg1: i32, %arg2: i32) -> (i32, i32) {
    %c0_i32 = arith.constant 0 : i32
    return %arg0, %arg1 : i32, i32
  }
}

module attributes {stable_mosaic.version = 11 : i64} {
  func.func @_attention_kernel(%arg0: i32, %arg1: memref<1x8x96xbf16, #tpu.memory_space<vmem>>, %arg2: memref<1x1x8xf32, #tpu.memory_space<vmem>>, %arg3: memref<1x8x32xbf16, #tpu.memory_space<vmem>>) attributes {dimension_semantics = [#tpu.dimension_semantics<parallel>], iteration_bounds = array<i64: 2>, scalar_prefetch = 0 : i64, scratch_operands = 0 : i64, tpu.core_type = #tpu.core_type<tc>, window_params = [{transform_indices = @transform_0, window_bounds = array<i64: 1, 8, 96>}, {transform_indices = @transform_1, window_bounds = array<i64: 1, 1, 8>}, {transform_indices = @transform_2, window_bounds = array<i64: 1, 8, 32>}]} {
    %c0 = arith.constant 0 : index
    %c0_0 = arith.constant 0 : index
    %c0_1 = arith.constant 0 : index
    %0 = vector.load %arg1[%c0, %c0_0, %c0_1] : memref<1x8x96xbf16, #tpu.memory_space<vmem>>, vector<1x8x96xbf16>
    %1 = vector.shape_cast %0 : vector<1x8x96xbf16> to vector<8x96xbf16>
    %c0_2 = arith.constant 0 : index
    %c0_3 = arith.constant 0 : index
    %c0_4 = arith.constant 0 : index
    %2 = vector.load %arg2[%c0_2, %c0_3, %c0_4] : memref<1x1x8xf32, #tpu.memory_space<vmem>>, vector<1x1x8xf32>
    %3 = vector.shape_cast %2 : vector<1x1x8xf32> to vector<1x8xf32>
    %4 = vector.extract_strided_slice %1 {offsets = [0, 0], sizes = [8, 8], strides = [1, 1]} : vector<8x96xbf16> to vector<8x8xbf16>
    %5 = vector.extract_strided_slice %1 {offsets = [0, 32], sizes = [8, 8], strides = [1, 1]} : vector<8x96xbf16> to vector<8x8xbf16>
    %6 = vector.extract_strided_slice %1 {offsets = [0, 64], sizes = [8, 8], strides = [1, 1]} : vector<8x96xbf16> to vector<8x8xbf16>
    %cst = arith.constant dense<0.000000e+00> : vector<8x8xf32>
    %7 = tpu.matmul %4, %5, %cst {dimension_numbers = #tpu.dot_dimension_numbers<[1], [1], [0], [0], [0, 0, 1, 0], [], []>} : vector<8x8xbf16>, vector<8x8xbf16>, vector<8x8xf32> -> vector<8x8xf32>
    %cst_5 = arith.constant 0.353553385 : f32
    %8 = vector.broadcast %cst_5 : f32 to vector<8x8xf32>
    %9 = arith.mulf %7, %8 : vector<8x8xf32>
    %10 = vector.broadcast %3 : vector<1x8xf32> to vector<8x8xf32>
    %11 = arith.addf %9, %10 : vector<8x8xf32>
    %cst_6 = arith.constant dense<0xFF800000> : vector<8xf32>
    %12 = vector.multi_reduction <maximumf>, %11, %cst_6 [1] : vector<8x8xf32> to vector<8xf32>
    %13 = vector.shape_cast %12 : vector<8xf32> to vector<8x1xf32>
    %14 = vector.broadcast %13 : vector<8x1xf32> to vector<8x8xf32>
    %15 = arith.subf %11, %14 : vector<8x8xf32>
    %16 = math.exp %15 : vector<8x8xf32>
    %cst_7 = arith.constant dense<0.000000e+00> : vector<8xf32>
    %17 = vector.multi_reduction <add>, %16, %cst_7 [1] : vector<8x8xf32> to vector<8xf32>
    %18 = vector.shape_cast %17 : vector<8xf32> to vector<8x1xf32>
    %19 = tpu.reciprocal %18 {approx = true} : vector<8x1xf32> -> vector<8x1xf32>
    %20 = vector.broadcast %19 : vector<8x1xf32> to vector<8x8xf32>
    %21 = arith.mulf %16, %20 : vector<8x8xf32>
    %22 = arith.truncf %21 : vector<8x8xf32> to vector<8x8xbf16>
    %cst_8 = arith.constant dense<0.000000e+00> : vector<8x8xf32>
    %23 = tpu.matmul %22, %6, %cst_8 {dimension_numbers = #tpu.dot_dimension_numbers<[1], [0], [0], [1], [0, 0, 1, 1], [], []>} : vector<8x8xbf16>, vector<8x8xbf16>, vector<8x8xf32> -> vector<8x8xf32>
    %24 = arith.truncf %23 : vector<8x8xf32> to vector<8x8xbf16>
    %c0_9 = arith.constant 0 : index
    %c0_10 = arith.constant 0 : index
    %c0_11 = arith.constant 0 : index
    %25 = vector.load %arg3[%c0_9, %c0_10, %c0_11] : memref<1x8x32xbf16, #tpu.memory_space<vmem>>, vector<1x8x8xbf16>
    %26 = vector.shape_cast %25 : vector<1x8x8xbf16> to vector<8x8xbf16>
    %27 = vector.shape_cast %24 : vector<8x8xbf16> to vector<1x8x8xbf16>
    tpu.vector_store %arg3[%c0_9, %c0_10, %c0_11], %27 {strides = array<i32>} : memref<1x8x32xbf16, #tpu.memory_space<vmem>>, vector<1x8x8xbf16>,
    %28 = vector.extract_strided_slice %1 {offsets = [0, 8], sizes = [8, 8], strides = [1, 1]} : vector<8x96xbf16> to vector<8x8xbf16>
    %29 = vector.extract_strided_slice %1 {offsets = [0, 40], sizes = [8, 8], strides = [1, 1]} : vector<8x96xbf16> to vector<8x8xbf16>
    %30 = vector.extract_strided_slice %1 {offsets = [0, 72], sizes = [8, 8], strides = [1, 1]} : vector<8x96xbf16> to vector<8x8xbf16>
    %cst_12 = arith.constant dense<0.000000e+00> : vector<8x8xf32>
    %31 = tpu.matmul %28, %29, %cst_12 {dimension_numbers = #tpu.dot_dimension_numbers<[1], [1], [0], [0], [0, 0, 1, 0], [], []>} : vector<8x8xbf16>, vector<8x8xbf16>, vector<8x8xf32> -> vector<8x8xf32>
    %cst_13 = arith.constant 0.353553385 : f32
    %32 = vector.broadcast %cst_13 : f32 to vector<8x8xf32>
    %33 = arith.mulf %31, %32 : vector<8x8xf32>
    %34 = vector.broadcast %3 : vector<1x8xf32> to vector<8x8xf32>
    %35 = arith.addf %33, %34 : vector<8x8xf32>
    %cst_14 = arith.constant dense<0xFF800000> : vector<8xf32>
    %36 = vector.multi_reduction <maximumf>, %35, %cst_14 [1] : vector<8x8xf32> to vector<8xf32>
    %37 = vector.shape_cast %36 : vector<8xf32> to vector<8x1xf32>
    %38 = vector.broadcast %37 : vector<8x1xf32> to vector<8x8xf32>
    %39 = arith.subf %35, %38 : vector<8x8xf32>
    %40 = math.exp %39 : vector<8x8xf32>
    %cst_15 = arith.constant dense<0.000000e+00> : vector<8xf32>
    %41 = vector.multi_reduction <add>, %40, %cst_15 [1] : vector<8x8xf32> to vector<8xf32>
    %42 = vector.shape_cast %41 : vector<8xf32> to vector<8x1xf32>
    %43 = tpu.reciprocal %42 {approx = true} : vector<8x1xf32> -> vector<8x1xf32>
    %44 = vector.broadcast %43 : vector<8x1xf32> to vector<8x8xf32>
    %45 = arith.mulf %40, %44 : vector<8x8xf32>
    %46 = arith.truncf %45 : vector<8x8xf32> to vector<8x8xbf16>
    %cst_16 = arith.constant dense<0.000000e+00> : vector<8x8xf32>
    %47 = tpu.matmul %46, %30, %cst_16 {dimension_numbers = #tpu.dot_dimension_numbers<[1], [0], [0], [1], [0, 0, 1, 1], [], []>} : vector<8x8xbf16>, vector<8x8xbf16>, vector<8x8xf32> -> vector<8x8xf32>
    %48 = arith.truncf %47 : vector<8x8xf32> to vector<8x8xbf16>
    %c0_17 = arith.constant 0 : index
    %c0_18 = arith.constant 0 : index
    %c8 = arith.constant 8 : index
    %49 = vector.load %arg3[%c0_17, %c0_18, %c8] : memref<1x8x32xbf16, #tpu.memory_space<vmem>>, vector<1x8x8xbf16>
    %50 = vector.shape_cast %49 : vector<1x8x8xbf16> to vector<8x8xbf16>
    %51 = vector.shape_cast %48 : vector<8x8xbf16> to vector<1x8x8xbf16>
    tpu.vector_store %arg3[%c0_17, %c0_18, %c8], %51 {strides = array<i32>} : memref<1x8x32xbf16, #tpu.memory_space<vmem>>, vector<1x8x8xbf16>,
    %52 = vector.extract_strided_slice %1 {offsets = [0, 16], sizes = [8, 8], strides = [1, 1]} : vector<8x96xbf16> to vector<8x8xbf16>
    %53 = vector.extract_strided_slice %1 {offsets = [0, 48], sizes = [8, 8], strides = [1, 1]} : vector<8x96xbf16> to vector<8x8xbf16>
    %54 = vector.extract_strided_slice %1 {offsets = [0, 80], sizes = [8, 8], strides = [1, 1]} : vector<8x96xbf16> to vector<8x8xbf16>
    %cst_19 = arith.constant dense<0.000000e+00> : vector<8x8xf32>
    %55 = tpu.matmul %52, %53, %cst_19 {dimension_numbers = #tpu.dot_dimension_numbers<[1], [1], [0], [0], [0, 0, 1, 0], [], []>} : vector<8x8xbf16>, vector<8x8xbf16>, vector<8x8xf32> -> vector<8x8xf32>
    %cst_20 = arith.constant 0.353553385 : f32
    %56 = vector.broadcast %cst_20 : f32 to vector<8x8xf32>
    %57 = arith.mulf %55, %56 : vector<8x8xf32>
    %58 = vector.broadcast %3 : vector<1x8xf32> to vector<8x8xf32>
    %59 = arith.addf %57, %58 : vector<8x8xf32>
    %cst_21 = arith.constant dense<0xFF800000> : vector<8xf32>
    %60 = vector.multi_reduction <maximumf>, %59, %cst_21 [1] : vector<8x8xf32> to vector<8xf32>
    %61 = vector.shape_cast %60 : vector<8xf32> to vector<8x1xf32>
    %62 = vector.broadcast %61 : vector<8x1xf32> to vector<8x8xf32>
    %63 = arith.subf %59, %62 : vector<8x8xf32>
    %64 = math.exp %63 : vector<8x8xf32>
    %cst_22 = arith.constant dense<0.000000e+00> : vector<8xf32>
    %65 = vector.multi_reduction <add>, %64, %cst_22 [1] : vector<8x8xf32> to vector<8xf32>
    %66 = vector.shape_cast %65 : vector<8xf32> to vector<8x1xf32>
    %67 = tpu.reciprocal %66 {approx = true} : vector<8x1xf32> -> vector<8x1xf32>
    %68 = vector.broadcast %67 : vector<8x1xf32> to vector<8x8xf32>
    %69 = arith.mulf %64, %68 : vector<8x8xf32>
    %70 = arith.truncf %69 : vector<8x8xf32> to vector<8x8xbf16>
    %cst_23 = arith.constant dense<0.000000e+00> : vector<8x8xf32>
    %71 = tpu.matmul %70, %54, %cst_23 {dimension_numbers = #tpu.dot_dimension_numbers<[1], [0], [0], [1], [0, 0, 1, 1], [], []>} : vector<8x8xbf16>, vector<8x8xbf16>, vector<8x8xf32> -> vector<8x8xf32>
    %72 = arith.truncf %71 : vector<8x8xf32> to vector<8x8xbf16>
    %c0_24 = arith.constant 0 : index
    %c0_25 = arith.constant 0 : index
    %c16 = arith.constant 16 : index
    %73 = vector.load %arg3[%c0_24, %c0_25, %c16] : memref<1x8x32xbf16, #tpu.memory_space<vmem>>, vector<1x8x8xbf16>
    %74 = vector.shape_cast %73 : vector<1x8x8xbf16> to vector<8x8xbf16>
    %75 = vector.shape_cast %72 : vector<8x8xbf16> to vector<1x8x8xbf16>
    tpu.vector_store %arg3[%c0_24, %c0_25, %c16], %75 {strides = array<i32>} : memref<1x8x32xbf16, #tpu.memory_space<vmem>>, vector<1x8x8xbf16>,
    %76 = vector.extract_strided_slice %1 {offsets = [0, 24], sizes = [8, 8], strides = [1, 1]} : vector<8x96xbf16> to vector<8x8xbf16>
    %77 = vector.extract_strided_slice %1 {offsets = [0, 56], sizes = [8, 8], strides = [1, 1]} : vector<8x96xbf16> to vector<8x8xbf16>
    %78 = vector.extract_strided_slice %1 {offsets = [0, 88], sizes = [8, 8], strides = [1, 1]} : vector<8x96xbf16> to vector<8x8xbf16>
    %cst_26 = arith.constant dense<0.000000e+00> : vector<8x8xf32>
    %79 = tpu.matmul %76, %77, %cst_26 {dimension_numbers = #tpu.dot_dimension_numbers<[1], [1], [0], [0], [0, 0, 1, 0], [], []>} : vector<8x8xbf16>, vector<8x8xbf16>, vector<8x8xf32> -> vector<8x8xf32>
    %cst_27 = arith.constant 0.353553385 : f32
    %80 = vector.broadcast %cst_27 : f32 to vector<8x8xf32>
    %81 = arith.mulf %79, %80 : vector<8x8xf32>
    %82 = vector.broadcast %3 : vector<1x8xf32> to vector<8x8xf32>
    %83 = arith.addf %81, %82 : vector<8x8xf32>
    %cst_28 = arith.constant dense<0xFF800000> : vector<8xf32>
    %84 = vector.multi_reduction <maximumf>, %83, %cst_28 [1] : vector<8x8xf32> to vector<8xf32>
    %85 = vector.shape_cast %84 : vector<8xf32> to vector<8x1xf32>
    %86 = vector.broadcast %85 : vector<8x1xf32> to vector<8x8xf32>
    %87 = arith.subf %83, %86 : vector<8x8xf32>
    %88 = math.exp %87 : vector<8x8xf32>
    %cst_29 = arith.constant dense<0.000000e+00> : vector<8xf32>
    %89 = vector.multi_reduction <add>, %88, %cst_29 [1] : vector<8x8xf32> to vector<8xf32>
    %90 = vector.shape_cast %89 : vector<8xf32> to vector<8x1xf32>
    %91 = tpu.reciprocal %90 {approx = true} : vector<8x1xf32> -> vector<8x1xf32>
    %92 = vector.broadcast %91 : vector<8x1xf32> to vector<8x8xf32>
    %93 = arith.mulf %88, %92 : vector<8x8xf32>
    %94 = arith.truncf %93 : vector<8x8xf32> to vector<8x8xbf16>
    %cst_30 = arith.constant dense<0.000000e+00> : vector<8x8xf32>
    %95 = tpu.matmul %94, %78, %cst_30 {dimension_numbers = #tpu.dot_dimension_numbers<[1], [0], [0], [1], [0, 0, 1, 1], [], []>} : vector<8x8xbf16>, vector<8x8xbf16>, vector<8x8xf32> -> vector<8x8xf32>
    %96 = arith.truncf %95 : vector<8x8xf32> to vector<8x8xbf16>
    %c0_31 = arith.constant 0 : index
    %c0_32 = arith.constant 0 : index
    %c24 = arith.constant 24 : index
    %97 = vector.load %arg3[%c0_31, %c0_32, %c24] : memref<1x8x32xbf16, #tpu.memory_space<vmem>>, vector<1x8x8xbf16>
    %98 = vector.shape_cast %97 : vector<1x8x8xbf16> to vector<8x8xbf16>
    %99 = vector.shape_cast %96 : vector<8x8xbf16> to vector<1x8x8xbf16>
    tpu.vector_store %arg3[%c0_31, %c0_32, %c24], %99 {strides = array<i32>} : memref<1x8x32xbf16, #tpu.memory_space<vmem>>, vector<1x8x8xbf16>,
    return
  }
  func.func @transform_0(%arg0: i32) -> (i32, i32, i32) {
    %c0_i32 = arith.constant 0 : i32
    %c0_i32_0 = arith.constant 0 : i32
    %c0_i32_1 = arith.constant 0 : i32
    return %arg0, %c0_i32, %c0_i32_0 : i32, i32, i32
  }
  func.func @transform_1(%arg0: i32) -> (i32, i32, i32) {
    %c0_i32 = arith.constant 0 : i32
    %c0_i32_0 = arith.constant 0 : i32
    %c0_i32_1 = arith.constant 0 : i32
    return %arg0, %c0_i32, %c0_i32_0 : i32, i32, i32
  }
  func.func @transform_2(%arg0: i32) -> (i32, i32, i32) {
    %c0_i32 = arith.constant 0 : i32
    %c0_i32_0 = arith.constant 0 : i32
    %c0_i32_1 = arith.constant 0 : i32
    return %arg0, %c0_i32, %c0_i32_0 : i32, i32, i32
  }
}

module attributes {stable_mosaic.version = 11 : i64} {
  func.func @_matmul_res_ln_kernel(%arg0: i32, %arg1: i32, %arg2: memref<16x32xbf16, #tpu.memory_space<vmem>>, %arg3: memref<32x32xbf16, #tpu.memory_space<vmem>>, %arg4: memref<1x32xf32, #tpu.memory_space<vmem>>, %arg5: memref<16x32xbf16, #tpu.memory_space<vmem>>, %arg6: memref<1x32xf32, #tpu.memory_space<vmem>>, %arg7: memref<1x32xf32, #tpu.memory_space<vmem>>, %arg8: memref<16x32xbf16, #tpu.memory_space<vmem>>, %arg9: memref<16x32xf32, #tpu.memory_space<vmem>>) attributes {dimension_semantics = [#tpu.dimension_semantics<parallel>, #tpu.dimension_semantics<arbitrary>], iteration_bounds = array<i64: 1, 1>, scalar_prefetch = 0 : i64, scratch_operands = 1 : i64, tpu.core_type = #tpu.core_type<tc>, window_params = [{transform_indices = @transform_0, window_bounds = array<i64: 16, 32>}, {transform_indices = @transform_1, window_bounds = array<i64: 32, 32>}, {pipeline_mode = #tpu.pipeline_mode<synchronous>, transform_indices = @transform_2, window_bounds = array<i64: 1, 32>}, {transform_indices = @transform_3, window_bounds = array<i64: 16, 32>}, {pipeline_mode = #tpu.pipeline_mode<synchronous>, transform_indices = @transform_4, window_bounds = array<i64: 1, 32>}, {pipeline_mode = #tpu.pipeline_mode<synchronous>, transform_indices = @transform_5, window_bounds = array<i64: 1, 32>}, {transform_indices = @transform_6, window_bounds = array<i64: 16, 32>}]} {
    %c0_i32 = arith.constant 0 : i32
    %0 = arith.cmpi eq, %arg1, %c0_i32 : i32
    %1 = arith.extui %0 : i1 to i32
    %c0_i32_0 = arith.constant 0 : i32
    %2 = arith.cmpi ne, %1, %c0_i32_0 : i32
    scf.if %2 {
      %cst_10 = arith.constant 0.000000e+00 : f32
      %12 = vector.broadcast %cst_10 : f32 to vector<16x32xf32>
      %c0_11 = arith.constant 0 : index
      %c0_12 = arith.constant 0 : index
      %13 = vector.load %arg9[%c0_11, %c0_12] : memref<16x32xf32, #tpu.memory_space<vmem>>, vector<16x32xf32>
      tpu.vector_store %arg9[%c0_11, %c0_12], %12 {strides = array<i32>} : memref<16x32xf32, #tpu.memory_space<vmem>>, vector<16x32xf32>,
    } else {
    }
    %c0 = arith.constant 0 : index
    %c0_1 = arith.constant 0 : index
    %3 = vector.load %arg9[%c0, %c0_1] : memref<16x32xf32, #tpu.memory_space<vmem>>, vector<16x32xf32>
    %c0_2 = arith.constant 0 : index
    %c0_3 = arith.constant 0 : index
    %4 = vector.load %arg2[%c0_2, %c0_3] : memref<16x32xbf16, #tpu.memory_space<vmem>>, vector<16x32xbf16>
    %c0_4 = arith.constant 0 : index
    %c0_5 = arith.constant 0 : index
    %5 = vector.load %arg3[%c0_4, %c0_5] : memref<32x32xbf16, #tpu.memory_space<vmem>>, vector<32x32xbf16>
    %cst = arith.constant dense<0.000000e+00> : vector<16x32xf32>
    %6 = tpu.matmul %4, %5, %cst {dimension_numbers = #tpu.dot_dimension_numbers<[1], [0], [0], [1], [0, 0, 1, 1], [], []>} : vector<16x32xbf16>, vector<32x32xbf16>, vector<16x32xf32> -> vector<16x32xf32>
    %7 = arith.addf %3, %6 : vector<16x32xf32>
    %c0_6 = arith.constant 0 : index
    %c0_7 = arith.constant 0 : index
    %8 = vector.load %arg9[%c0_6, %c0_7] : memref<16x32xf32, #tpu.memory_space<vmem>>, vector<16x32xf32>
    tpu.vector_store %arg9[%c0_6, %c0_7], %7 {strides = array<i32>} : memref<16x32xf32, #tpu.memory_space<vmem>>, vector<16x32xf32>,
    %c0_i32_8 = arith.constant 0 : i32
    %9 = arith.cmpi eq, %arg1, %c0_i32_8 : i32
    %10 = arith.extui %9 : i1 to i32
    %c0_i32_9 = arith.constant 0 : i32
    %11 = arith.cmpi ne, %10, %c0_i32_9 : i32
    scf.if %11 {
      %c0_10 = arith.constant 0 : index
      %c0_11 = arith.constant 0 : index
      %12 = vector.load %arg9[%c0_10, %c0_11] : memref<16x32xf32, #tpu.memory_space<vmem>>, vector<16x32xf32>
      %c0_12 = arith.constant 0 : index
      %c0_13 = arith.constant 0 : index
      %13 = vector.load %arg4[%c0_12, %c0_13] : memref<1x32xf32, #tpu.memory_space<vmem>>, vector<1x32xf32>
      %14 = vector.broadcast %13 : vector<1x32xf32> to vector<16x32xf32>
      %15 = arith.addf %12, %14 : vector<16x32xf32>
      %c0_14 = arith.constant 0 : index
      %c0_15 = arith.constant 0 : index
      %16 = vector.load %arg5[%c0_14, %c0_15] : memref<16x32xbf16, #tpu.memory_space<vmem>>, vector<16x32xbf16>
      %17 = arith.extf %16 : vector<16x32xbf16> to vector<16x32xf32>
      %18 = arith.addf %15, %17 : vector<16x32xf32>
      %cst_16 = arith.constant dense<0.000000e+00> : vector<16xf32>
      %19 = vector.multi_reduction <add>, %18, %cst_16 [1] : vector<16x32xf32> to vector<16xf32>
      %20 = vector.shape_cast %19 : vector<16xf32> to vector<16x1xf32>
      %cst_17 = arith.constant 3.200000e+01 : f32
      %21 = vector.broadcast %cst_17 : f32 to vector<16x1xf32>
      %22 = arith.divf %20, %21 : vector<16x1xf32>
      %23 = vector.broadcast %22 : vector<16x1xf32> to vector<16x32xf32>
      %24 = arith.subf %18, %23 : vector<16x32xf32>
      %25 = arith.mulf %24, %24 : vector<16x32xf32>
      %cst_18 = arith.constant dense<0.000000e+00> : vector<16xf32>
      %26 = vector.multi_reduction <add>, %25, %cst_18 [1] : vector<16x32xf32> to vector<16xf32>
      %27 = vector.shape_cast %26 : vector<16xf32> to vector<16x1xf32>
      %cst_19 = arith.constant 3.200000e+01 : f32
      %28 = vector.broadcast %cst_19 : f32 to vector<16x1xf32>
      %29 = arith.divf %27, %28 : vector<16x1xf32>
      %cst_20 = arith.constant 9.99999996E-13 : f32
      %30 = vector.broadcast %cst_20 : f32 to vector<16x1xf32>
      %31 = arith.addf %29, %30 : vector<16x1xf32>
      %32 = math.rsqrt %31 : vector<16x1xf32>
      %33 = vector.broadcast %22 : vector<16x1xf32> to vector<16x32xf32>
      %34 = arith.subf %18, %33 : vector<16x32xf32>
      %35 = vector.broadcast %32 : vector<16x1xf32> to vector<16x32xf32>
      %36 = arith.mulf %34, %35 : vector<16x32xf32>
      %c0_21 = arith.constant 0 : index
      %c0_22 = arith.constant 0 : index
      %37 = vector.load %arg6[%c0_21, %c0_22] : memref<1x32xf32, #tpu.memory_space<vmem>>, vector<1x32xf32>
      %38 = vector.broadcast %37 : vector<1x32xf32> to vector<16x32xf32>
      %39 = arith.mulf %36, %38 : vector<16x32xf32>
      %c0_23 = arith.constant 0 : index
      %c0_24 = arith.constant 0 : index
      %40 = vector.load %arg7[%c0_23, %c0_24] : memref<1x32xf32, #tpu.memory_space<vmem>>, vector<1x32xf32>
      %41 = vector.broadcast %40 : vector<1x32xf32> to vector<16x32xf32>
      %42 = arith.addf %39, %41 : vector<16x32xf32>
      %43 = arith.truncf %42 : vector<16x32xf32> to vector<16x32xbf16>
      %c0_25 = arith.constant 0 : index
      %c0_26 = arith.constant 0 : index
      %44 = vector.load %arg8[%c0_25, %c0_26] : memref<16x32xbf16, #tpu.memory_space<vmem>>, vector<16x32xbf16>
      tpu.vector_store %arg8[%c0_25, %c0_26], %43 {strides = array<i32>} : memref<16x32xbf16, #tpu.memory_space<vmem>>, vector<16x32xbf16>,
    } else {
    }
    return
  }
  func.func @transform_0(%arg0: i32, %arg1: i32) -> (i32, i32) {
    %c0_i32 = arith.constant 0 : i32
    return %arg0, %arg1 : i32, i32
  }
  func.func @transform_1(%arg0: i32, %arg1: i32) -> (i32, i32) {
    %c0_i32 = arith.constant 0 : i32
    %c0_i32_0 = arith.constant 0 : i32
    return %arg1, %c0_i32 : i32, i32
  }
  func.func @transform_2(%arg0: i32, %arg1: i32) -> (i32, i32) {
    %c0_i32 = arith.constant 0 : i32
    %c0_i32_0 = arith.constant 0 : i32
    %c0_i32_1 = arith.constant 0 : i32
    return %c0_i32, %c0_i32_0 : i32, i32
  }
  func.func @transform_3(%arg0: i32, %arg1: i32) -> (i32, i32) {
    %c0_i32 = arith.constant 0 : i32
    %c0_i32_0 = arith.constant 0 : i32
    return %arg0, %c0_i32 : i32, i32
  }
  func.func @transform_4(%arg0: i32, %arg1: i32) -> (i32, i32) {
    %c0_i32 = arith.constant 0 : i32
    %c0_i32_0 = arith.constant 0 : i32
    %c0_i32_1 = arith.constant 0 : i32
    return %c0_i32, %c0_i32_0 : i32, i32
  }
  func.func @transform_5(%arg0: i32, %arg1: i32) -> (i32, i32) {
    %c0_i32 = arith.constant 0 : i32
    %c0_i32_0 = arith.constant 0 : i32
    %c0_i32_1 = arith.constant 0 : i32
    return %c0_i32, %c0_i32_0 : i32, i32
  }
  func.func @transform_6(%arg0: i32, %arg1: i32) -> (i32, i32) {
    %c0_i32 = arith.constant 0 : i32
    %c0_i32_0 = arith.constant 0 : i32
    return %arg0, %c0_i32 : i32, i32
  }
}

module attributes {stable_mosaic.version = 11 : i64} {
  func.func @_matmul_bias_kernel(%arg0: i32, %arg1: i32, %arg2: i32, %arg3: memref<16x32xbf16, #tpu.memory_space<vmem>>, %arg4: memref<32x64xbf16, #tpu.memory_space<vmem>>, %arg5: memref<1x64xf32, #tpu.memory_space<vmem>>, %arg6: memref<16x64xbf16, #tpu.memory_space<vmem>>, %arg7: memref<16x64xf32, #tpu.memory_space<vmem>>) attributes {dimension_semantics = [#tpu.dimension_semantics<parallel>, #tpu.dimension_semantics<parallel>, #tpu.dimension_semantics<arbitrary>], iteration_bounds = array<i64: 1, 1, 1>, scalar_prefetch = 0 : i64, scratch_operands = 1 : i64, tpu.core_type = #tpu.core_type<tc>, window_params = [{transform_indices = @transform_0, window_bounds = array<i64: 16, 32>}, {transform_indices = @transform_1, window_bounds = array<i64: 32, 64>}, {transform_indices = @transform_2, window_bounds = array<i64: 1, 64>}, {transform_indices = @transform_3, window_bounds = array<i64: 16, 64>}]} {
    %c0_i32 = arith.constant 0 : i32
    %0 = arith.cmpi eq, %arg2, %c0_i32 : i32
    %1 = arith.extui %0 : i1 to i32
    %c0_i32_0 = arith.constant 0 : i32
    %2 = arith.cmpi ne, %1, %c0_i32_0 : i32
    scf.if %2 {
      %cst_10 = arith.constant 0.000000e+00 : f32
      %12 = vector.broadcast %cst_10 : f32 to vector<16x64xf32>
      %c0_11 = arith.constant 0 : index
      %c0_12 = arith.constant 0 : index
      %13 = vector.load %arg7[%c0_11, %c0_12] : memref<16x64xf32, #tpu.memory_space<vmem>>, vector<16x64xf32>
      tpu.vector_store %arg7[%c0_11, %c0_12], %12 {strides = array<i32>} : memref<16x64xf32, #tpu.memory_space<vmem>>, vector<16x64xf32>,
    } else {
    }
    %c0 = arith.constant 0 : index
    %c0_1 = arith.constant 0 : index
    %3 = vector.load %arg7[%c0, %c0_1] : memref<16x64xf32, #tpu.memory_space<vmem>>, vector<16x64xf32>
    %c0_2 = arith.constant 0 : index
    %c0_3 = arith.constant 0 : index
    %4 = vector.load %arg3[%c0_2, %c0_3] : memref<16x32xbf16, #tpu.memory_space<vmem>>, vector<16x32xbf16>
    %c0_4 = arith.constant 0 : index
    %c0_5 = arith.constant 0 : index
    %5 = vector.load %arg4[%c0_4, %c0_5] : memref<32x64xbf16, #tpu.memory_space<vmem>>, vector<32x64xbf16>
    %cst = arith.constant dense<0.000000e+00> : vector<16x64xf32>
    %6 = tpu.matmul %4, %5, %cst {dimension_numbers = #tpu.dot_dimension_numbers<[1], [0], [0], [1], [0, 0, 1, 1], [], []>} : vector<16x32xbf16>, vector<32x64xbf16>, vector<16x64xf32> -> vector<16x64xf32>
    %7 = arith.addf %3, %6 : vector<16x64xf32>
    %c0_6 = arith.constant 0 : index
    %c0_7 = arith.constant 0 : index
    %8 = vector.load %arg7[%c0_6, %c0_7] : memref<16x64xf32, #tpu.memory_space<vmem>>, vector<16x64xf32>
    tpu.vector_store %arg7[%c0_6, %c0_7], %7 {strides = array<i32>} : memref<16x64xf32, #tpu.memory_space<vmem>>, vector<16x64xf32>,
    %c0_i32_8 = arith.constant 0 : i32
    %9 = arith.cmpi eq, %arg2, %c0_i32_8 : i32
    %10 = arith.extui %9 : i1 to i32
    %c0_i32_9 = arith.constant 0 : i32
    %11 = arith.cmpi ne, %10, %c0_i32_9 : i32
    scf.if %11 {
      %c0_10 = arith.constant 0 : index
      %c0_11 = arith.constant 0 : index
      %12 = vector.load %arg7[%c0_10, %c0_11] : memref<16x64xf32, #tpu.memory_space<vmem>>, vector<16x64xf32>
      %c0_12 = arith.constant 0 : index
      %c0_13 = arith.constant 0 : index
      %13 = vector.load %arg5[%c0_12, %c0_13] : memref<1x64xf32, #tpu.memory_space<vmem>>, vector<1x64xf32>
      %14 = vector.broadcast %13 : vector<1x64xf32> to vector<16x64xf32>
      %15 = arith.addf %12, %14 : vector<16x64xf32>
      %cst_14 = arith.constant 5.000000e-01 : f32
      %16 = vector.broadcast %cst_14 : f32 to vector<16x64xf32>
      %17 = arith.mulf %16, %15 : vector<16x64xf32>
      %cst_15 = arith.constant 4.471500e-02 : f32
      %18 = vector.broadcast %cst_15 : f32 to vector<16x64xf32>
      %19 = arith.mulf %18, %15 : vector<16x64xf32>
      %20 = arith.mulf %19, %15 : vector<16x64xf32>
      %21 = arith.mulf %20, %15 : vector<16x64xf32>
      %22 = arith.addf %15, %21 : vector<16x64xf32>
      %cst_16 = arith.constant 0.797884583 : f32
      %23 = vector.broadcast %cst_16 : f32 to vector<16x64xf32>
      %24 = arith.mulf %23, %22 : vector<16x64xf32>
      %25 = math.tanh %24 : vector<16x64xf32>
      %cst_17 = arith.constant 1.000000e+00 : f32
      %26 = vector.broadcast %cst_17 : f32 to vector<16x64xf32>
      %27 = arith.addf %26, %25 : vector<16x64xf32>
      %28 = arith.mulf %17, %27 : vector<16x64xf32>
      %29 = arith.truncf %28 : vector<16x64xf32> to vector<16x64xbf16>
      %c0_18 = arith.constant 0 : index
      %c0_19 = arith.constant 0 : index
      %30 = vector.load %arg6[%c0_18, %c0_19] : memref<16x64xbf16, #tpu.memory_space<vmem>>, vector<16x64xbf16>
      tpu.vector_store %arg6[%c0_18, %c0_19], %29 {strides = array<i32>} : memref<16x64xbf16, #tpu.memory_space<vmem>>, vector<16x64xbf16>,
    } else {
    }
    return
  }
  func.func @transform_0(%arg0: i32, %arg1: i32, %arg2: i32) -> (i32, i32) {
    %c0_i32 = arith.constant 0 : i32
    return %arg0, %arg2 : i32, i32
  }
  func.func @transform_1(%arg0: i32, %arg1: i32, %arg2: i32) -> (i32, i32) {
    %c0_i32 = arith.constant 0 : i32
    return %arg2, %arg1 : i32, i32
  }
  func.func @transform_2(%arg0: i32, %arg1: i32, %arg2: i32) -> (i32, i32) {
    %c0_i32 = arith.constant 0 : i32
    %c0_i32_0 = arith.constant 0 : i32
    return %c0_i32, %arg1 : i32, i32
  }
  func.func @transform_3(%arg0: i32, %arg1: i32, %arg2: i32) -> (i32, i32) {
    %c0_i32 = arith.constant 0 : i32
    return %arg0, %arg1 : i32, i32
  }
}

module attributes {stable_mosaic.version = 11 : i64} {
  func.func @_matmul_res_ln_kernel(%arg0: i32, %arg1: i32, %arg2: memref<16x64xbf16, #tpu.memory_space<vmem>>, %arg3: memref<64x32xbf16, #tpu.memory_space<vmem>>, %arg4: memref<1x32xf32, #tpu.memory_space<vmem>>, %arg5: memref<16x32xbf16, #tpu.memory_space<vmem>>, %arg6: memref<1x32xf32, #tpu.memory_space<vmem>>, %arg7: memref<1x32xf32, #tpu.memory_space<vmem>>, %arg8: memref<16x32xbf16, #tpu.memory_space<vmem>>, %arg9: memref<16x32xf32, #tpu.memory_space<vmem>>) attributes {dimension_semantics = [#tpu.dimension_semantics<parallel>, #tpu.dimension_semantics<arbitrary>], iteration_bounds = array<i64: 1, 1>, scalar_prefetch = 0 : i64, scratch_operands = 1 : i64, tpu.core_type = #tpu.core_type<tc>, window_params = [{transform_indices = @transform_0, window_bounds = array<i64: 16, 64>}, {transform_indices = @transform_1, window_bounds = array<i64: 64, 32>}, {pipeline_mode = #tpu.pipeline_mode<synchronous>, transform_indices = @transform_2, window_bounds = array<i64: 1, 32>}, {transform_indices = @transform_3, window_bounds = array<i64: 16, 32>}, {pipeline_mode = #tpu.pipeline_mode<synchronous>, transform_indices = @transform_4, window_bounds = array<i64: 1, 32>}, {pipeline_mode = #tpu.pipeline_mode<synchronous>, transform_indices = @transform_5, window_bounds = array<i64: 1, 32>}, {transform_indices = @transform_6, window_bounds = array<i64: 16, 32>}]} {
    %c0_i32 = arith.constant 0 : i32
    %0 = arith.cmpi eq, %arg1, %c0_i32 : i32
    %1 = arith.extui %0 : i1 to i32
    %c0_i32_0 = arith.constant 0 : i32
    %2 = arith.cmpi ne, %1, %c0_i32_0 : i32
    scf.if %2 {
      %cst_10 = arith.constant 0.000000e+00 : f32
      %12 = vector.broadcast %cst_10 : f32 to vector<16x32xf32>
      %c0_11 = arith.constant 0 : index
      %c0_12 = arith.constant 0 : index
      %13 = vector.load %arg9[%c0_11, %c0_12] : memref<16x32xf32, #tpu.memory_space<vmem>>, vector<16x32xf32>
      tpu.vector_store %arg9[%c0_11, %c0_12], %12 {strides = array<i32>} : memref<16x32xf32, #tpu.memory_space<vmem>>, vector<16x32xf32>,
    } else {
    }
    %c0 = arith.constant 0 : index
    %c0_1 = arith.constant 0 : index
    %3 = vector.load %arg9[%c0, %c0_1] : memref<16x32xf32, #tpu.memory_space<vmem>>, vector<16x32xf32>
    %c0_2 = arith.constant 0 : index
    %c0_3 = arith.constant 0 : index
    %4 = vector.load %arg2[%c0_2, %c0_3] : memref<16x64xbf16, #tpu.memory_space<vmem>>, vector<16x64xbf16>
    %c0_4 = arith.constant 0 : index
    %c0_5 = arith.constant 0 : index
    %5 = vector.load %arg3[%c0_4, %c0_5] : memref<64x32xbf16, #tpu.memory_space<vmem>>, vector<64x32xbf16>
    %cst = arith.constant dense<0.000000e+00> : vector<16x32xf32>
    %6 = tpu.matmul %4, %5, %cst {dimension_numbers = #tpu.dot_dimension_numbers<[1], [0], [0], [1], [0, 0, 1, 1], [], []>} : vector<16x64xbf16>, vector<64x32xbf16>, vector<16x32xf32> -> vector<16x32xf32>
    %7 = arith.addf %3, %6 : vector<16x32xf32>
    %c0_6 = arith.constant 0 : index
    %c0_7 = arith.constant 0 : index
    %8 = vector.load %arg9[%c0_6, %c0_7] : memref<16x32xf32, #tpu.memory_space<vmem>>, vector<16x32xf32>
    tpu.vector_store %arg9[%c0_6, %c0_7], %7 {strides = array<i32>} : memref<16x32xf32, #tpu.memory_space<vmem>>, vector<16x32xf32>,
    %c0_i32_8 = arith.constant 0 : i32
    %9 = arith.cmpi eq, %arg1, %c0_i32_8 : i32
    %10 = arith.extui %9 : i1 to i32
    %c0_i32_9 = arith.constant 0 : i32
    %11 = arith.cmpi ne, %10, %c0_i32_9 : i32
    scf.if %11 {
      %c0_10 = arith.constant 0 : index
      %c0_11 = arith.constant 0 : index
      %12 = vector.load %arg9[%c0_10, %c0_11] : memref<16x32xf32, #tpu.memory_space<vmem>>, vector<16x32xf32>
      %c0_12 = arith.constant 0 : index
      %c0_13 = arith.constant 0 : index
      %13 = vector.load %arg4[%c0_12, %c0_13] : memref<1x32xf32, #tpu.memory_space<vmem>>, vector<1x32xf32>
      %14 = vector.broadcast %13 : vector<1x32xf32> to vector<16x32xf32>
      %15 = arith.addf %12, %14 : vector<16x32xf32>
      %c0_14 = arith.constant 0 : index
      %c0_15 = arith.constant 0 : index
      %16 = vector.load %arg5[%c0_14, %c0_15] : memref<16x32xbf16, #tpu.memory_space<vmem>>, vector<16x32xbf16>
      %17 = arith.extf %16 : vector<16x32xbf16> to vector<16x32xf32>
      %18 = arith.addf %15, %17 : vector<16x32xf32>
      %cst_16 = arith.constant dense<0.000000e+00> : vector<16xf32>
      %19 = vector.multi_reduction <add>, %18, %cst_16 [1] : vector<16x32xf32> to vector<16xf32>
      %20 = vector.shape_cast %19 : vector<16xf32> to vector<16x1xf32>
      %cst_17 = arith.constant 3.200000e+01 : f32
      %21 = vector.broadcast %cst_17 : f32 to vector<16x1xf32>
      %22 = arith.divf %20, %21 : vector<16x1xf32>
      %23 = vector.broadcast %22 : vector<16x1xf32> to vector<16x32xf32>
      %24 = arith.subf %18, %23 : vector<16x32xf32>
      %25 = arith.mulf %24, %24 : vector<16x32xf32>
      %cst_18 = arith.constant dense<0.000000e+00> : vector<16xf32>
      %26 = vector.multi_reduction <add>, %25, %cst_18 [1] : vector<16x32xf32> to vector<16xf32>
      %27 = vector.shape_cast %26 : vector<16xf32> to vector<16x1xf32>
      %cst_19 = arith.constant 3.200000e+01 : f32
      %28 = vector.broadcast %cst_19 : f32 to vector<16x1xf32>
      %29 = arith.divf %27, %28 : vector<16x1xf32>
      %cst_20 = arith.constant 9.99999996E-13 : f32
      %30 = vector.broadcast %cst_20 : f32 to vector<16x1xf32>
      %31 = arith.addf %29, %30 : vector<16x1xf32>
      %32 = math.rsqrt %31 : vector<16x1xf32>
      %33 = vector.broadcast %22 : vector<16x1xf32> to vector<16x32xf32>
      %34 = arith.subf %18, %33 : vector<16x32xf32>
      %35 = vector.broadcast %32 : vector<16x1xf32> to vector<16x32xf32>
      %36 = arith.mulf %34, %35 : vector<16x32xf32>
      %c0_21 = arith.constant 0 : index
      %c0_22 = arith.constant 0 : index
      %37 = vector.load %arg6[%c0_21, %c0_22] : memref<1x32xf32, #tpu.memory_space<vmem>>, vector<1x32xf32>
      %38 = vector.broadcast %37 : vector<1x32xf32> to vector<16x32xf32>
      %39 = arith.mulf %36, %38 : vector<16x32xf32>
      %c0_23 = arith.constant 0 : index
      %c0_24 = arith.constant 0 : index
      %40 = vector.load %arg7[%c0_23, %c0_24] : memref<1x32xf32, #tpu.memory_space<vmem>>, vector<1x32xf32>
      %41 = vector.broadcast %40 : vector<1x32xf32> to vector<16x32xf32>
      %42 = arith.addf %39, %41 : vector<16x32xf32>
      %43 = arith.truncf %42 : vector<16x32xf32> to vector<16x32xbf16>
      %c0_25 = arith.constant 0 : index
      %c0_26 = arith.constant 0 : index
      %44 = vector.load %arg8[%c0_25, %c0_26] : memref<16x32xbf16, #tpu.memory_space<vmem>>, vector<16x32xbf16>
      tpu.vector_store %arg8[%c0_25, %c0_26], %43 {strides = array<i32>} : memref<16x32xbf16, #tpu.memory_space<vmem>>, vector<16x32xbf16>,
    } else {
    }
    return
  }
  func.func @transform_0(%arg0: i32, %arg1: i32) -> (i32, i32) {
    %c0_i32 = arith.constant 0 : i32
    return %arg0, %arg1 : i32, i32
  }
  func.func @transform_1(%arg0: i32, %arg1: i32) -> (i32, i32) {
    %c0_i32 = arith.constant 0 : i32
    %c0_i32_0 = arith.constant 0 : i32
    return %arg1, %c0_i32 : i32, i32
  }
  func.func @transform_2(%arg0: i32, %arg1: i32) -> (i32, i32) {
    %c0_i32 = arith.constant 0 : i32
    %c0_i32_0 = arith.constant 0 : i32
    %c0_i32_1 = arith.constant 0 : i32
    return %c0_i32, %c0_i32_0 : i32, i32
  }
  func.func @transform_3(%arg0: i32, %arg1: i32) -> (i32, i32) {
    %c0_i32 = arith.constant 0 : i32
    %c0_i32_0 = arith.constant 0 : i32
    return %arg0, %c0_i32 : i32, i32
  }
  func.func @transform_4(%arg0: i32, %arg1: i32) -> (i32, i32) {
    %c0_i32 = arith.constant 0 : i32
    %c0_i32_0 = arith.constant 0 : i32
    %c0_i32_1 = arith.constant 0 : i32
    return %c0_i32, %c0_i32_0 : i32, i32
  }
  func.func @transform_5(%arg0: i32, %arg1: i32) -> (i32, i32) {
    %c0_i32 = arith.constant 0 : i32
    %c0_i32_0 = arith.constant 0 : i32
    %c0_i32_1 = arith.constant 0 : i32
    return %c0_i32, %c0_i32_0 : i32, i32
  }
  func.func @transform_6(%arg0: i32, %arg1: i32) -> (i32, i32) {
    %c0_i32 = arith.constant 0 : i32
    %c0_i32_0 = arith.constant 0 : i32
    return %arg0, %c0_i32 : i32, i32
  }
}

</mosaic_0001>

<bundles_post_ra>
// kernel: _lambda_.12
= control target key start
LH: loop header
LB: loop body
LE: loop exit
PB: predicated region body
PF: predicated region fallthrough
CT: control target
= control target key end

     0   :  { %vm19_vm0 = vcmask 785408   ;;  %v151_v0 = vmov 0.0   ;;  %vm152_vm1 = vmmov 0   ;;  %vm47_vm2 = vcmask 261120   ;;  %s195_s1 = inlined_call_operand.vmem [shape: bf16[32,96], index: 1, kind: input, shape index: {}]   ;;  %s196_s0 = inlined_call_operand.vmem [shape: bf16[16,32], index: 0, kind: input, shape index: {}]   ;;  %s197_s2 = inlined_call_operand.vmem [shape: f32[1,96], index: 2, kind: input, shape index: {}]   ;;  %s198_s3 = inlined_call_operand.vmem [shape: bf16[16,96], index: 3, kind: output, shape index: {}]  }
   0x1   :  { %138 = vmatprep.subr.bf16.mxu0 %v151_v0  ;;  %v148_v1 = vld [vmem:[%s195_s1] sm:$0xff]   ;;  %142 = vmatprep.mubr.msk.bf16.mxu0 %vm152_vm1, %v151_v0  ;;  %20 = vst.msk [vmem:[#allocation2] sm:$0xff] %vm19_vm0, %v151_v0  ;;  %21 = vst.msk [vmem:[#allocation2 + $0x8] sm:$0xff] %vm19_vm0, %v151_v0  ;;  %v149_v2 = vld [vmem:[%s195_s1 + $0x8] sm:$0xff]   ;;  %vm119_vm3 = vcmask 781312  }
   0x2   :  { %139 = vmatpush3.bf16.msra.mxu0 %v148_v1  ;;  %v150_v3 = vld [vmem:[%s196_s0] sm:$0xff]  }
   0x3   :  { %140 = vmatprep.subr.bf16.mxu0 %v151_v0  ;;  %v130_v12 = vld [vmem:[%s197_s2] ss:$0 sm:$0xff] }
   0x6   :  { %141 = vmatpush3.bf16.msra.mxu0 %v149_v2 }
   0x8   :  { %v22_v4 = vld [vmem:[#allocation2] sm:$0xff]  ;;  %v23_v6 = vld [vmem:[#allocation2 + $0x8] sm:$0xff] }
   0x9   :  { %143 = vmatmul.mubr.msk.bf16.vlgmr.msra.gmra.mrb[0].mxu0 %vm47_vm2, %v150_v3 }
  0xdc   :  { %v85_v5 = vpop.f32.mrb[0].mxu0 }
  0xdd   :  { %v92_v7 = vadd.f32 %v85_v5, %v22_v4  ;;  %v144_v8 = vpop.f32.mrb[1].mxu0 }
  0xde   :  { %v88_v9 = vpop.f32.mrb[2].mxu0 }
  0xdf   :  { %95 = vst.msk [vmem:[#allocation2] sm:$0xff] %vm19_vm0, %v92_v7  ;;  %v93_v10 = vadd.f32 %v88_v9, %v23_v6  ;;  %v145_v11 = vpop.f32.mrb[3].mxu0 }
  0xe1   :  { %96 = vst.msk [vmem:[#allocation2 + $0x8] sm:$0xff] %vm19_vm0, %v93_v10 }
  0xe6   :  { %v100_v13 = vld [vmem:[#allocation2] sm:$0xff] }
  0xe7   :  { %v109_v14 = vadd.f32 %v130_v12, %v100_v13 }
  0xe8   :  { %v101_v15 = vld [vmem:[#allocation2 + $0x8] sm:$0xff] }
  0xe9   :  { %v133_v16 = vpack.c.bf16 %v109_v14, %v109_v14  ;;  %v110_v17 = vadd.f32 %v130_v12, %v101_v15 }
  0xeb   :  { %120 = vst.msk [vmem:[%s198_s3] sm:$0xf] %vm119_vm3, %v133_v16  ;;  %v134_v18 = vpack.c.bf16 %v110_v17, %v110_v17 }
  0xed   :  { %121 = vst.msk [vmem:[%s198_s3 + $0x4] sm:$0xf] %vm119_vm3, %v134_v18 }

// kernel: _lambda_.11
= control target key start
LH: loop header
LB: loop body
LE: loop exit
PB: predicated region body
PF: predicated region fallthrough
CT: control target
= control target key end

     0   :  { %vm16_vm0 = vcmask 261120   ;;  %vm70_vm1 = vcmask 257024   ;;  %s129_s0 = inlined_call_operand.vmem [shape: f32[16,32], index: 0, kind: input, shape index: {}]   ;;  %s130_s1 = inlined_call_operand.vmem [shape: f32[1,32], index: 1, kind: input, shape index: {}]   ;;  %s131_s2 = inlined_call_operand.vmem [shape: f32[1,32], index: 2, kind: input, shape index: {}]   ;;  %s132_s3 = inlined_call_operand.vmem [shape: bf16[16,32], index: 3, kind: output, shape index: {}]  }
   0x1   :  { %v14_v0 = vld [vmem:[%s129_s0] sm:$0xff]  ;;  %v15_v1 = vld [vmem:[%s129_s0 + $0x8] sm:$0xff] }
   0x2   :  { %v17_v2 = vsel %vm16_vm0, %v14_v0, 0.0  ;;  %v20_v3 = vsel %vm16_vm0, %v15_v1, 0.0  ;;  %v77_v21 = vld [vmem:[%s130_s1] ss:$0 sm:$0xff] }
   0x3   :  { %18 = vadd.xlane.f32.xlu0 %v17_v2  ;;  %v78_v23 = vld [vmem:[%s131_s2] ss:$0 sm:$0xff] }
   0x7   :  { %21 = vadd.xlane.f32.xlu0 %v20_v3 }
  0x90   :  { %v19_v4 = vpop.xlane.xlu0 %18 }
  0x91   :  { %v24_v5 = vmul.f32 0.03125, %v19_v4 }
  0x93   :  { %v26_v6 = vsub.f32 %v14_v0, %v24_v5 }
  0x94   :  { %v22_v7 = vpop.xlane.xlu0 %21 }
  0x95   :  { %v25_v8 = vmul.f32 0.03125, %v22_v7  ;;  %v28_v9 = vmul.f32 %v26_v6, %v26_v6 }
  0x97   :  { %v27_v10 = vsub.f32 %v15_v1, %v25_v8  ;;  %v30_v11 = vsel %vm16_vm0, %v28_v9, 0.0 }
  0x98   :  { %31 = vadd.xlane.f32.xlu1 %v30_v11 }
  0x99   :  { %v29_v12 = vmul.f32 %v27_v10, %v27_v10 }
  0x9b   :  { %v33_v13 = vsel %vm16_vm0, %v29_v12, 0.0 }
  0x9c   :  { %34 = vadd.xlane.f32.xlu1 %v33_v13 }
 0x125   :  { %v32_v14 = vpop.xlane.xlu1 %31 }
 0x126   :  { %v36_v15 = vmul.f32 0.03125, %v32_v14 }
 0x128   :  { %v38_v16 = vadd.f32 1e-12, %v36_v15 }
 0x129   :  { %v35_v17 = vpop.xlane.xlu1 %34 }
 0x12a   :  { %83 = vrsqrt.f32 %v38_v16  ;;  %v37_v18 = vmul.f32 0.03125, %v35_v17 }
 0x12c   :  { %v39_v19 = vadd.f32 1e-12, %v37_v18 }
 0x12e   :  { %85 = vrsqrt.f32 %v39_v19 }
 0x134   :  { %v84_v20 = vpop.eup %83 }
 0x135   :  { %v42_v22 = vmul.f32 %v84_v20, %v26_v6 }
 0x137   :  { %v51_v24 = vmul.f32 %v77_v21, %v42_v22 }
 0x138   :  { %v86_v25 = vpop.eup %85 }
 0x139   :  { %v60_v26 = vadd.f32 %v78_v23, %v51_v24  ;;  %v43_v27 = vmul.f32 %v86_v25, %v27_v10 }
 0x13b   :  { %v81_v28 = vpack.c.bf16 %v60_v26, %v60_v26  ;;  %v52_v29 = vmul.f32 %v77_v21, %v43_v27 }
 0x13d   :  { %71 = vst.msk [vmem:[%s132_s3] sm:$0xf] %vm70_vm1, %v81_v28  ;;  %v61_v30 = vadd.f32 %v78_v23, %v52_v29 }
 0x13f   :  { %v82_v31 = vpack.c.bf16 %v61_v30, %v61_v30 }
 0x141   :  { %72 = vst.msk [vmem:[%s132_s3 + $0x4] sm:$0xf] %vm70_vm1, %v82_v31 }

// kernel: _lambda_.14
= control target key start
LH: loop header
LB: loop body
LE: loop exit
PB: predicated region body
PF: predicated region fallthrough
CT: control target
= control target key end

     0   :  { %vm28_vm0 = vcmask 261120   ;;  %v220_v0 = vmov 0.0   ;;  %vm221_vm1 = vmmov 0   ;;  %vm178_vm2 = vcmask 257024   ;;  %s293_s1 = inlined_call_operand.vmem [shape: bf16[32,32], index: 1, kind: input, shape index: {}]   ;;  %s294_s0 = inlined_call_operand.vmem [shape: bf16[16,32], index: 0, kind: input, shape index: {}]   ;;  %s295_s3 = inlined_call_operand.vmem [shape: bf16[16,32], index: 3, kind: input, shape index: {}]   ;;  %s296_s2 = inlined_call_operand.vmem [shape: f32[1,32], index: 2, kind: input, shape index: {}, may-alias: {2,5}]   ;;  %s297_s4 = inlined_call_operand.vmem [shape: f32[1,32], index: 4, kind: input, shape index: {}]   ;;  %s298_s5 = inlined_call_operand.vmem [shape: f32[1,32], index: 5, kind: input, shape index: {}, may-alias: {2,5}]   ;;  %s299_s6 = inlined_call_operand.vmem [shape: bf16[16,32], index: 6, kind: output, shape index: {}]  }
   0x1   :  { %203 = vmatprep.subr.bf16.mxu0 %v220_v0  ;;  %v213_v1 = vld [vmem:[%s293_s1] sm:$0xff]   ;;  %207 = vmatprep.mubr.msk.bf16.mxu0 %vm221_vm1, %v220_v0  ;;  %29 = vst.msk [vmem:[#allocation2] sm:$0xff] %vm28_vm0, %v220_v0  ;;  %30 = vst.msk [vmem:[#allocation2 + $0x8] sm:$0xff] %vm28_vm0, %v220_v0  ;;  %v214_v2 = vld [vmem:[%s293_s1 + $0x8] sm:$0xff]  }
   0x2   :  { %204 = vmatpush3.bf16.msra.mxu0 %v213_v1  ;;  %v215_v3 = vld [vmem:[%s294_s0] sm:$0xff]  }
   0x3   :  { %205 = vmatprep.subr.bf16.mxu0 %v220_v0  ;;  %v197_v12 = vld [vmem:[%s295_s3] sm:$0xff]  }
   0x4   :  { %v189_v13 = vld [vmem:[%s296_s2] ss:$0 sm:$0xff]  ;;  %v198_v14 = vunpack.c.l.bf16 %v197_v12  ;;  %v199_v17 = vunpack.c.h.bf16 %v197_v12 }
   0x5   :  { %v190_v41 = vld [vmem:[%s297_s4] ss:$0 sm:$0xff] }
   0x6   :  { %206 = vmatpush3.bf16.msra.mxu0 %v214_v2  ;;  %v191_v43 = vld [vmem:[%s298_s5] ss:$0 sm:$0xff] }
   0x8   :  { %v31_v4 = vld [vmem:[#allocation2] sm:$0xff]  ;;  %v32_v6 = vld [vmem:[#allocation2 + $0x8] sm:$0xff] }
   0x9   :  { %208 = vmatmul.mubr.msk.bf16.vlgmr.msra.gmra.mrb[0].mxu0 %vm28_vm0, %v215_v3 }
  0xdc   :  { %v94_v5 = vpop.f32.mrb[0].mxu0 }
  0xdd   :  { %v101_v7 = vadd.f32 %v94_v5, %v31_v4  ;;  %v209_v8 = vpop.f32.mrb[1].mxu0 }
  0xde   :  { %v97_v9 = vpop.f32.mrb[2].mxu0 }
  0xdf   :  { %103 = vst.msk [vmem:[#allocation2] sm:$0xff] %vm28_vm0, %v101_v7  ;;  %v102_v10 = vadd.f32 %v97_v9, %v32_v6  ;;  %v210_v11 = vpop.f32.mrb[3].mxu0 }
  0xe1   :  { %104 = vst.msk [vmem:[#allocation2 + $0x8] sm:$0xff] %vm28_vm0, %v102_v10 }
  0xe6   :  { %v108_v15 = vld [vmem:[#allocation2] sm:$0xff] }
  0xe7   :  { %v117_v16 = vadd.f32 %v189_v13, %v108_v15 }
  0xe8   :  { %v109_v18 = vld [vmem:[#allocation2 + $0x8] sm:$0xff] }
  0xe9   :  { %v123_v19 = vadd.f32 %v198_v14, %v117_v16  ;;  %v118_v20 = vadd.f32 %v189_v13, %v109_v18 }
  0xeb   :  { %v125_v21 = vsel %vm28_vm0, %v123_v19, 0.0  ;;  %v124_v22 = vadd.f32 %v199_v17, %v118_v20 }
  0xec   :  { %126 = vadd.xlane.f32.xlu0 %v125_v21 }
  0xed   :  { %v128_v23 = vsel %vm28_vm0, %v124_v22, 0.0 }
  0xf0   :  { %129 = vadd.xlane.f32.xlu0 %v128_v23 }
 0x179   :  { %v127_v24 = vpop.xlane.xlu0 %126 }
 0x17a   :  { %v132_v25 = vmul.f32 0.03125, %v127_v24 }
 0x17c   :  { %v134_v26 = vsub.f32 %v123_v19, %v132_v25 }
 0x17d   :  { %v130_v27 = vpop.xlane.xlu0 %129 }
 0x17e   :  { %v133_v28 = vmul.f32 0.03125, %v130_v27  ;;  %v136_v29 = vmul.f32 %v134_v26, %v134_v26 }
 0x180   :  { %v135_v30 = vsub.f32 %v124_v22, %v133_v28  ;;  %v138_v31 = vsel %vm28_vm0, %v136_v29, 0.0 }
 0x181   :  { %139 = vadd.xlane.f32.xlu1 %v138_v31 }
 0x182   :  { %v137_v32 = vmul.f32 %v135_v30, %v135_v30 }
 0x184   :  { %v141_v33 = vsel %vm28_vm0, %v137_v32, 0.0 }
 0x185   :  { %142 = vadd.xlane.f32.xlu1 %v141_v33 }
 0x20e   :  { %v140_v34 = vpop.xlane.xlu1 %139 }
 0x20f   :  { %v144_v35 = vmul.f32 0.03125, %v140_v34 }
 0x211   :  { %v146_v36 = vadd.f32 1e-12, %v144_v35 }
 0x212   :  { %v143_v37 = vpop.xlane.xlu1 %142 }
 0x213   :  { %216 = vrsqrt.f32 %v146_v36  ;;  %v145_v38 = vmul.f32 0.03125, %v143_v37 }
 0x215   :  { %v147_v39 = vadd.f32 1e-12, %v145_v38 }
 0x217   :  { %218 = vrsqrt.f32 %v147_v39 }
 0x21d   :  { %v217_v40 = vpop.eup %216 }
 0x21e   :  { %v150_v42 = vmul.f32 %v217_v40, %v134_v26 }
 0x220   :  { %v159_v44 = vmul.f32 %v190_v41, %v150_v42 }
 0x221   :  { %v219_v45 = vpop.eup %218 }
 0x222   :  { %v168_v46 = vadd.f32 %v191_v43, %v159_v44  ;;  %v151_v47 = vmul.f32 %v219_v45, %v135_v30 }
 0x224   :  { %v194_v48 = vpack.c.bf16 %v168_v46, %v168_v46  ;;  %v160_v49 = vmul.f32 %v190_v41, %v151_v47 }
 0x226   :  { %179 = vst.msk [vmem:[%s299_s6] sm:$0xf] %vm178_vm2, %v194_v48  ;;  %v169_v50 = vadd.f32 %v191_v43, %v160_v49 }
 0x228   :  { %v195_v51 = vpack.c.bf16 %v169_v50, %v169_v50 }
 0x22a   :  { %180 = vst.msk [vmem:[%s299_s6 + $0x4] sm:$0xf] %vm178_vm2, %v195_v51 }

// kernel: _lambda_.13
= control target key start
LH: loop header
LB: loop body
LE: loop exit
PB: predicated region body
PF: predicated region fallthrough
CT: control target
= control target key end

     0   :  { %s874_s9 = smov 0   ;;  %s975_s0 = inlined_call_operand.vmem [shape: bf16[2,8,96], index: 0, kind: input, shape index: {}]   ;;  %s976_s1 = inlined_call_operand.vmem [shape: f32[2,1,8], index: 1, kind: input, shape index: {}]   ;;  %s977_s2 = inlined_call_operand.vmem [shape: bf16[2,8,32], index: 2, kind: output, shape index: {}]  }
   0x1 LB: > { %s705_s10 = sadd.s32 4294967295, %s841_s9   ;;  %p709_p0 = scmp.ge.s32.totalorder %s841_s9, 1  ;;  %s841_s9 = sphi %s874_s9, %s12_s9  }
   0x2   : > { %p119_p1 = scmp.lt.s32.totalorder %s841_s9, 3 }
   0x4   : > { %p120_p2 = pnand %p709_p0, %p119_p1 }
   0x5   : > { %p142_p3 = scmp.lt.s32.totalorder (!%p120_p2), %s705_s10, 1  ;;  %v843_v0 = vmov (!%p120_p2), 0.0   ;;  %vm844_vm0 = vmmov (!%p120_p2), 0   ;;  %s845_s15 = smov (!%p120_p2), 96   ;;  %vm161_vm1 = vcmask (!%p120_p2), 64512   ;;  %vm233_vm2 = vcmask (!%p120_p2), 1043456  }
   0x6   : > { %123 = sbr.rel (%p120_p2) target bundleno = 1605 (0x645), region = 28  ;;  %746 = vmatprep.subr.bf16.mxu0 (!%p120_p2), %v843_v0  ;;  %748 = vmatprep.mubr.msk.bf16.mxu0 (!%p120_p2), %vm844_vm0, %v843_v0  ;;  %s846_s16 = smov (!%p120_p2), 64   ;;  %vm278_vm3 = vcmask (!%p120_p2), 60416   ;;  %vm399_vm4 = vcmask (!%p120_p2), 126016   ;;  %vm520_vm5 = vcmask (!%p120_p2), 191616   ;;  %vm641_vm6 = vcmask (!%p120_p2), 257216  }
   0x7   : > { %752 = vmatprep.subr.bf16.mxu1 (!%p120_p2), %v843_v0  ;;  %754 = vmatprep.mubr.msk.bf16.mxu1 (!%p120_p2), %vm844_vm0, %v843_v0  ;;  %s847_s17 = smov (!%p120_p2), 88   ;;  %s848_s21 = smov (!%p120_p2), 72  }
   0x8   : > { %s849_s22 = smov (!%p120_p2), 120   ;;  %s850_s23 = smov (!%p120_p2), 80  }
   0x9   : > { %s851_s24 = smov (!%p120_p2), 112   ;;  %s852_s25 = smov (!%p120_p2), 104  }
   0xa   : > { %s853_s29 = smov (!%p120_p2), 56   ;;  %s854_s30 = smov (!%p120_p2), 48  }
   0xb   : > { %s855_s3 = smov (!%p120_p2), 40   ;;  %s856_s4 = smov (!%p120_p2), 8  }
   0xc   : > { %s857_s5 = smov (!%p120_p2), 16   ;;  %s858_s6 = smov (!%p120_p2), 24  }
   0xd   : > { %s979_s10 = smov (!%p142_p3, %s705_s10), 1 }
   0xe   : > { %s710_s11 = sshll.u32 %s979_s10, 2  ;;  %s148_s20 = scalar_lea.vmem %s976_s1, %s979_s10 }
   0xf   : > { %s145_s14 = scalar_lea.vmem %s975_s0, %s710_s11  ;;  %v910_v6 = vld [vmem:[%s148_s20] ss:$0 sm:$0xff]  ;;  %s942_s28 = scalar_lea.vmem %s977_s2, %s710_s11 }
  0x10   : > { %v154_v1 = vld [vmem:[%s145_s14] sm:$0xf] }
  0x11   : > { %v896_v2 = vcombine.low %v154_v1, %v154_v1 }
  0x13   : > { %159 = vrot.lane.b32.xlu0 %v896_v2, %s845_s15  ;;  %228 = vrot.lane.b32.xlu1 %v896_v2, %s846_s16 }
  0x17   : > { %282 = vrot.lane.b32.xlu1 %v896_v2, %s847_s17 }
  0x85   : > { %v160_v3 = vpop.permute.xlu0 %159  ;;  %v229_v13 = vpop.permute.xlu1 %228 }
  0x86   : > { %v166_v4 = vsel %vm161_vm1, %v160_v3, 0  ;;  %v235_v14 = vsel %vm233_vm2, %v229_v13, 0 }
  0x87   : > { %747 = vmatpush3.bf16.xpose.msra.mxu0 %v166_v4  ;;  %753 = vmatpush3.bf16.msra.mxu1 %v235_v14 }
  0x88   : > { %764 = vmatprep.subr.bf16.mxu0 %v843_v0  ;;  %758 = vmatprep.subr.bf16.mxu1 %v843_v0 }
  0x89   : > { %v283_v20 = vpop.permute.xlu1 %282 }
  0x8a   : > { %v288_v26 = vsel %vm161_vm1, %v283_v20, 0 }
  0x8e   : > { %749 = vmatmul.mubr.msk.bf16.vlgmr.msra.gmra.mrb[0].mxu0 %vm161_vm1, %v154_v1 }
  0x8f   : > { %766 = vmatprep.mubr.msk.bf16.mxu0 %vm844_vm0, %v843_v0 }
 0x161   : > { %v202_v5 = vpop.f32.mrb[0].mxu0 }
 0x162   : > { %v208_v7 = vmul.f32 0.35355338, %v202_v5  ;;  %v750_v8 = vpop.f32.mrb[1].mxu0 }
 0x163   : > { %v205_v9 = vpop.f32.mrb[2].mxu0 }
 0x164   : > { %v751_v10 = vpop.f32.mrb[3].mxu0  ;;  %v215_v11 = vadd.f32 %v910_v6, %v208_v7 }
 0x166   : > { %v216_v12 = vsel %vm161_vm1, %v215_v11, -inf }
 0x167   : > { %217 = vmax.xlane.f32.xlu0 %v216_v12 }
 0x17d   : > { %524 = vrot.lane.b32.xlu0 %v896_v2, %s848_s21 }
 0x1f4   : > { %v218_v15 = vpop.xlane.xlu0 %217 }
 0x1f5   : > { %v219_v16 = vsub.f32 %v215_v11, %v218_v15 }
 0x1f7   : > { %v220_v17 = vmul.f32 1.442695, %v219_v16 }
 0x1f8   : > { %v525_v29 = vpop.permute.xlu0 %524 }
 0x1f9   : > { %819 = vpow2.f32 %v220_v17  ;;  %v530_v31 = vsel %vm161_vm1, %v525_v29, 0 }
 0x203   : > { %v820_v18 = vpop.eup %819 }
 0x204   : > { %v222_v19 = vsel %vm161_vm1, %v820_v18, 0.0 }
 0x205   : > { %223 = vadd.xlane.f32.xlu1 %v222_v19 }
 0x216   : > { %280 = vrot.lane.b32.xlu1 %v896_v2, %s849_s22 }
 0x21a   : > { %403 = vrot.lane.b32.xlu1 %v896_v2, %s850_s23 }
 0x21e   : > { %401 = vrot.lane.b32.xlu1 %v896_v2, %s851_s24 }
 0x222   : > { %522 = vrot.lane.b32.xlu1 %v896_v2, %s852_s25 }
 0x292   : > { %v224_v21 = vpop.xlane.xlu1 %223 }
 0x293   : > { %821 = vrcp.f32 %v224_v21 }
 0x296   : > { %v281_v24 = vpop.permute.xlu1 %280 }
 0x29a   : > { %v404_v27 = vpop.permute.xlu1 %403 }
 0x29b   : > { %v409_v28 = vsel %vm161_vm1, %v404_v27, 0 }
 0x29d   : > { %v822_v22 = vpop.eup %821 }
 0x29e   : > { %v226_v23 = vmul.f32 %v822_v22, %v820_v18  ;;  %v402_v30 = vpop.permute.xlu1 %401 }
 0x2a0   : > { %v227_v25 = vpack.c.bf16 %v226_v23, %v226_v23 }
 0x2a2   : > { %755 = vmatmul.mubr.msk.bf16.vlgmr.msra.gmra.mrb[0].mxu1 %vm161_vm1, %v227_v25  ;;  %v523_v32 = vpop.permute.xlu1 %522 }
 0x2a3   : > { %759 = vmatpush3.bf16.xpose.msra.mxu1 %v288_v26  ;;  %760 = vmatprep.mubr.msk.bf16.mxu1 %vm844_vm0, %v843_v0 }
 0x2a4   : > { %770 = vmatprep.subr.bf16.mxu1 %v843_v0 }
 0x2aa   : > { %761 = vmatmul.mubr.msk.bf16.vlgmr.msra.gmra.mrb[4].mxu1 %vm161_vm1, %v281_v24 }
 0x2ab   : > { %771 = vmatpush3.bf16.xpose.msra.mxu1 %v409_v28  ;;  %772 = vmatprep.mubr.msk.bf16.mxu1 %vm844_vm0, %v843_v0 }
 0x2ac   : > { %782 = vmatprep.subr.bf16.mxu1 %v843_v0 }
 0x2b2   : > { %773 = vmatmul.mubr.msk.bf16.vlgmr.msra.gmra.mrb[8].mxu1 %vm161_vm1, %v402_v30 }
 0x2b3   : > { %783 = vmatpush3.bf16.xpose.msra.mxu1 %v530_v31  ;;  %784 = vmatprep.mubr.msk.bf16.mxu1 %vm844_vm0, %v843_v0 }
 0x2ba   : > { %785 = vmatmul.mubr.msk.bf16.vlgmr.msra.gmra.mrb[12].mxu1 %vm161_vm1, %v523_v32 }
 0x375   : > { %v271_v33 = vpop.f32.mrb[0].mxu1 }
 0x376   : > { %v277_v34 = vpack.c.bf16 %v271_v33, %v271_v33  ;;  %v756_v35 = vpop.f32.mrb[1].mxu1 }
 0x377   : > { %v274_v36 = vpop.f32.mrb[2].mxu1 }
 0x378   : > { %279 = vst.msk [vmem:[%s942_s28] sm:$0xf] %vm278_vm3, %v277_v34  ;;  %v757_v37 = vpop.f32.mrb[3].mxu1 }
 0x37d   : > { %v324_v38 = vpop.f32.mrb[4].mxu1 }
 0x37e   : > { %v330_v39 = vmul.f32 0.35355338, %v324_v38  ;;  %v762_v40 = vpop.f32.mrb[5].mxu1 }
 0x37f   : > { %v327_v41 = vpop.f32.mrb[6].mxu1 }
 0x380   : > { %v763_v42 = vpop.f32.mrb[7].mxu1  ;;  %v331_v43 = vadd.f32 %v910_v6, %v330_v39 }
 0x382   : > { %v332_v44 = vsel %vm161_vm1, %v331_v43, -inf }
 0x383   : > { %333 = vmax.xlane.f32.xlu1 %v332_v44 }
 0x385   : > { %v445_v45 = vpop.f32.mrb[8].mxu1 }
 0x386   : > { %v451_v46 = vmul.f32 0.35355338, %v445_v45  ;;  %v774_v47 = vpop.f32.mrb[9].mxu1 }
 0x387   : > { %v448_v48 = vpop.f32.mrb[10].mxu1 }
 0x388   : > { %v452_v49 = vadd.f32 %v910_v6, %v451_v46  ;;  %v775_v50 = vpop.f32.mrb[11].mxu1 }
 0x38a   : > { %v453_v51 = vsel %vm161_vm1, %v452_v49, -inf }
 0x38b   : > { %454 = vmax.xlane.f32.xlu0 %v453_v51 }
 0x38d   : > { %v566_v52 = vpop.f32.mrb[12].mxu1 }
 0x38e   : > { %v572_v53 = vmul.f32 0.35355338, %v566_v52  ;;  %v786_v54 = vpop.f32.mrb[13].mxu1 }
 0x38f   : > { %v569_v55 = vpop.f32.mrb[14].mxu1 }
 0x390   : > { %v573_v56 = vadd.f32 %v910_v6, %v572_v53  ;;  %v787_v57 = vpop.f32.mrb[15].mxu1 }
 0x392   : > { %v574_v58 = vsel %vm161_vm1, %v573_v56, -inf }
 0x393   : > { %575 = vmax.xlane.f32.xlu1 %v574_v58 }
 0x410   : > { %v334_v59 = vpop.xlane.xlu1 %333 }
 0x411   : > { %v335_v60 = vsub.f32 %v331_v43, %v334_v59 }
 0x413   : > { %v336_v61 = vmul.f32 1.442695, %v335_v60 }
 0x415   : > { %823 = vpow2.f32 %v336_v61 }
 0x418   : > { %v455_v6 = vpop.xlane.xlu0 %454 }
 0x419   : > { %v456_v8 = vsub.f32 %v452_v49, %v455_v6 }
 0x41b   : > { %v457_v9 = vmul.f32 1.442695, %v456_v8 }
 0x41f   : > { %v824_v62 = vpop.eup %823 }
 0x420   : > { %v576_v63 = vpop.xlane.xlu1 %575  ;;  %v338_v1 = vsel %vm161_vm1, %v824_v62, 0.0 }
 0x421   : > { %v577_v3 = vsub.f32 %v573_v56, %v576_v63  ;;  %339 = vadd.xlane.f32.xlu1 %v338_v1 }
 0x423   : > { %v578_v4 = vmul.f32 1.442695, %v577_v3 }
 0x425   : > { %825 = vpow2.f32 %v578_v4 }
 0x426   : > { %827 = vpow2.f32 %v457_v9 }
 0x42f   : > { %v826_v5 = vpop.eup %825 }
 0x430   : > { %v580_v7 = vsel %vm161_vm1, %v826_v5, 0.0  ;;  %v828_v10 = vpop.eup %827 }
 0x431   : > { %581 = vadd.xlane.f32.xlu0 %v580_v7  ;;  %v459_v11 = vsel %vm161_vm1, %v828_v10, 0.0 }
 0x432   : > { %344 = vrot.lane.b32.xlu1 %v896_v2, %s853_s29 }
 0x447   : > { %465 = vrot.lane.b32.xlu0 %v896_v2, %s854_s30 }
 0x456   : > { %460 = vadd.xlane.f32.xlu1 %v459_v11 }
 0x467   : > { %586 = vrot.lane.b32.xlu1 %v896_v2, %s855_s3 }
 0x4ae   : > { %v340_v12 = vpop.xlane.xlu1 %339 }
 0x4af   : > { %829 = vrcp.f32 %v340_v12 }
 0x4b2   : > { %v345_v13 = vpop.permute.xlu1 %344 }
 0x4b3   : > { %v350_v14 = vsel %vm233_vm2, %v345_v13, 0 }
 0x4b4   : > { %765 = vmatpush3.bf16.msra.mxu0 %v350_v14 }
 0x4b5   : > { %776 = vmatprep.subr.bf16.mxu0 %v843_v0 }
 0x4b9   : > { %v830_v15 = vpop.eup %829 }
 0x4ba   : > { %v342_v16 = vmul.f32 %v830_v15, %v824_v62 }
 0x4bc   : > { %v343_v17 = vpack.c.bf16 %v342_v16, %v342_v16 }
 0x4be   : > { %767 = vmatmul.mubr.msk.bf16.vlgmr.msra.gmra.mrb[4].mxu0 %vm161_vm1, %v343_v17  ;;  %v582_v18 = vpop.xlane.xlu0 %581 }
 0x4bf   : > { %778 = vmatprep.mubr.msk.bf16.mxu0 %vm844_vm0, %v843_v0 }
 0x4c2   : > { %v466_v19 = vpop.permute.xlu0 %465 }
 0x4c3   : > { %v471_v2 = vsel %vm233_vm2, %v466_v19, 0 }
 0x4c4   : > { %777 = vmatpush3.bf16.msra.mxu0 %v471_v2 }
 0x4c5   : > { %788 = vmatprep.subr.bf16.mxu0 %v843_v0 }
 0x4e3   : > { %v461_v20 = vpop.xlane.xlu1 %460 }
 0x4e4   : > { %831 = vrcp.f32 %v461_v20 }
 0x4e5   : > { %833 = vrcp.f32 %v582_v18 }
 0x4e7   : > { %v587_v22 = vpop.permute.xlu1 %586 }
 0x4e8   : > { %v592_v24 = vsel %vm233_vm2, %v587_v22, 0 }
 0x4ee   : > { %v832_v21 = vpop.eup %831 }
 0x4ef   : > { %v463_v23 = vmul.f32 %v832_v21, %v828_v10  ;;  %v834_v26 = vpop.eup %833 }
 0x4f0   : > { %v584_v27 = vmul.f32 %v834_v26, %v826_v5 }
 0x4f1   : > { %v464_v25 = vpack.c.bf16 %v463_v23, %v463_v23 }
 0x4f2   : > { %v585_v28 = vpack.c.bf16 %v584_v27, %v584_v27 }
 0x4f3   : > { %779 = vmatmul.mubr.msk.bf16.vlgmr.msra.gmra.mrb[8].mxu0 %vm161_vm1, %v464_v25 }
 0x4f4   : > { %789 = vmatpush3.bf16.msra.mxu0 %v592_v24  ;;  %790 = vmatprep.mubr.msk.bf16.mxu0 %vm844_vm0, %v843_v0 }
 0x4fb   : > { %791 = vmatmul.mubr.msk.bf16.vlgmr.msra.gmra.mrb[12].mxu0 %vm161_vm1, %v585_v28 }
 0x591   : > { %v386_v29 = vpop.f32.mrb[4].mxu0 }
 0x592   : > { %v727_v30 = vpack.c.bf16 %v386_v29, %v386_v29  ;;  %v768_v31 = vpop.f32.mrb[5].mxu0 }
 0x593   : > { %v389_v32 = vpop.f32.mrb[6].mxu0 }
 0x594   : > { %396 = vrot.lane.b32.xlu1 %v727_v30, %s856_s4  ;;  %v769_v33 = vpop.f32.mrb[7].mxu0 }
 0x5c6   : > { %v507_v34 = vpop.f32.mrb[8].mxu0 }
 0x5c7   : > { %v728_v35 = vpack.c.bf16 %v507_v34, %v507_v34  ;;  %v780_v36 = vpop.f32.mrb[9].mxu0 }
 0x5c8   : > { %v510_v37 = vpop.f32.mrb[10].mxu0 }
 0x5c9   : > { %517 = vrot.lane.b32.xlu0 %v728_v35, %s857_s5  ;;  %v781_v0 = vpop.f32.mrb[11].mxu0 }
 0x5ce   : > { %v628_v38 = vpop.f32.mrb[12].mxu0 }
 0x5cf   : > { %v729_v39 = vpack.c.bf16 %v628_v38, %v628_v38  ;;  %v792_v40 = vpop.f32.mrb[13].mxu0 }
 0x5d0   : > { %v631_v41 = vpop.f32.mrb[14].mxu0 }
 0x5d1   : > { %638 = vrot.lane.b32.xlu1 %v729_v39, %s858_s6  ;;  %v793_v42 = vpop.f32.mrb[15].mxu0 }
 0x606   : > { %v397_v43 = vpop.permute.xlu1 %396 }
 0x607   : > { %400 = vst.msk [vmem:[%s942_s28] sm:$0xf] %vm399_vm4, %v397_v43 }
 0x63b   : > { %v518_v44 = vpop.permute.xlu0 %517 }
 0x63c   : > { %521 = vst.msk [vmem:[%s942_s28] sm:$0xf] %vm520_vm5, %v518_v44 }
 0x643   : > { %v639_v45 = vpop.permute.xlu1 %638 }
 0x644   : > { %642 = vst.msk [vmem:[%s942_s28] sm:$0xf] %vm641_vm6, %v639_v45 }
 0x645 PF: > { %s12_s9 = sadd.s32 1, %s841_s9  }
 0x646   : > { %p9_p4 = scmp.ge.s32.totalorder %s12_s9, 4  }
 0x648   :  { %11 = sbr.rel (!%p9_p4) target bundleno = 1 (0x1), region = 61 }

// kernel: _lambda_.15
= control target key start
LH: loop header
LB: loop body
LE: loop exit
PB: predicated region body
PF: predicated region fallthrough
CT: control target
= control target key end

     0   :  { %vm19_vm0 = vcmask 523264   ;;  %v173_v0 = vmov 0.0   ;;  %vm174_vm1 = vmmov 0   ;;  %vm47_vm2 = vcmask 261120   ;;  %s217_s1 = inlined_call_operand.vmem [shape: bf16[32,64], index: 1, kind: input, shape index: {}]   ;;  %s218_s0 = inlined_call_operand.vmem [shape: bf16[16,32], index: 0, kind: input, shape index: {}]   ;;  %s219_s2 = inlined_call_operand.vmem [shape: f32[1,64], index: 2, kind: input, shape index: {}]   ;;  %s220_s3 = inlined_call_operand.vmem [shape: bf16[16,64], index: 3, kind: output, shape index: {}]  }
   0x1   :  { %156 = vmatprep.subr.bf16.mxu0 %v173_v0  ;;  %v166_v1 = vld [vmem:[%s217_s1] sm:$0xff]   ;;  %160 = vmatprep.mubr.msk.bf16.mxu0 %vm174_vm1, %v173_v0  ;;  %20 = vst.msk [vmem:[#allocation2] sm:$0xff] %vm19_vm0, %v173_v0  ;;  %21 = vst.msk [vmem:[#allocation2 + $0x8] sm:$0xff] %vm19_vm0, %v173_v0  ;;  %v167_v2 = vld [vmem:[%s217_s1 + $0x8] sm:$0xff]   ;;  %vm137_vm3 = vcmask 519168  }
   0x2   :  { %157 = vmatpush3.bf16.msra.mxu0 %v166_v1  ;;  %v168_v3 = vld [vmem:[%s218_s0] sm:$0xff]  }
   0x3   :  { %158 = vmatprep.subr.bf16.mxu0 %v173_v0  ;;  %v148_v12 = vld [vmem:[%s219_s2] ss:$0 sm:$0xff] }
   0x6   :  { %159 = vmatpush3.bf16.msra.mxu0 %v167_v2 }
   0x8   :  { %v22_v4 = vld [vmem:[#allocation2] sm:$0xff]  ;;  %v23_v6 = vld [vmem:[#allocation2 + $0x8] sm:$0xff] }
   0x9   :  { %161 = vmatmul.mubr.msk.bf16.vlgmr.msra.gmra.mrb[0].mxu0 %vm47_vm2, %v168_v3 }
  0xdc   :  { %v85_v5 = vpop.f32.mrb[0].mxu0 }
  0xdd   :  { %v92_v7 = vadd.f32 %v85_v5, %v22_v4  ;;  %v162_v8 = vpop.f32.mrb[1].mxu0 }
  0xde   :  { %v88_v9 = vpop.f32.mrb[2].mxu0 }
  0xdf   :  { %95 = vst.msk [vmem:[#allocation2] sm:$0xff] %vm19_vm0, %v92_v7  ;;  %v93_v10 = vadd.f32 %v88_v9, %v23_v6  ;;  %v163_v11 = vpop.f32.mrb[3].mxu0 }
  0xe1   :  { %96 = vst.msk [vmem:[#allocation2 + $0x8] sm:$0xff] %vm19_vm0, %v93_v10 }
  0xe6   :  { %v100_v13 = vld [vmem:[#allocation2] sm:$0xff] }
  0xe7   :  { %v109_v14 = vadd.f32 %v148_v12, %v100_v13 }
  0xe8   :  { %v101_v15 = vld [vmem:[#allocation2 + $0x8] sm:$0xff] }
  0xe9   :  { %v113_v16 = vmul.f32 0.044715, %v109_v14  ;;  %v110_v17 = vadd.f32 %v148_v12, %v101_v15  ;;  %v111_v28 = vmul.f32 0.5, %v109_v14 }
  0xeb   :  { %v115_v18 = vmul.f32 %v113_v16, %v109_v14  ;;  %v114_v19 = vmul.f32 0.044715, %v110_v17  ;;  %v112_v32 = vmul.f32 0.5, %v110_v17 }
  0xed   :  { %v117_v20 = vmul.f32 %v115_v18, %v109_v14  ;;  %v116_v21 = vmul.f32 %v114_v19, %v110_v17 }
  0xef   :  { %v119_v22 = vadd.f32 %v117_v20, %v109_v14  ;;  %v118_v23 = vmul.f32 %v116_v21, %v110_v17 }
  0xf1   :  { %v121_v24 = vmul.f32 0.7978846, %v119_v22  ;;  %v120_v25 = vadd.f32 %v118_v23, %v110_v17 }
  0xf3   :  { %169 = vtanh.f32 %v121_v24  ;;  %v122_v26 = vmul.f32 0.7978846, %v120_v25 }
  0xf5   :  { %171 = vtanh.f32 %v122_v26 }
  0xfd   :  { %v170_v27 = vpop.eup %169 }
  0xfe   :  { %v125_v29 = vadd.f32 1.0, %v170_v27 }
  0xff   :  { %v172_v30 = vpop.eup %171 }
 0x100   :  { %v127_v31 = vmul.f32 %v125_v29, %v111_v28  ;;  %v126_v33 = vadd.f32 1.0, %v172_v30 }
 0x102   :  { %v151_v34 = vpack.c.bf16 %v127_v31, %v127_v31  ;;  %v128_v35 = vmul.f32 %v126_v33, %v112_v32 }
 0x104   :  { %138 = vst.msk [vmem:[%s220_s3] sm:$0xf] %vm137_vm3, %v151_v34  ;;  %v152_v36 = vpack.c.bf16 %v128_v35, %v128_v35 }
 0x106   :  { %139 = vst.msk [vmem:[%s220_s3 + $0x4] sm:$0xf] %vm137_vm3, %v152_v36 }

// kernel: _lambda_.16
= control target key start
LH: loop header
LB: loop body
LE: loop exit
PB: predicated region body
PF: predicated region fallthrough
CT: control target
= control target key end

     0   :  { %vm28_vm0 = vcmask 261120   ;;  %v247_v0 = vmov 0.0   ;;  %vm248_vm1 = vmmov 0   ;;  %vm72_vm2 = vcmask 523264   ;;  %s325_s1 = inlined_call_operand.vmem [shape: bf16[64,32], index: 1, kind: input, shape index: {}]   ;;  %s326_s0 = inlined_call_operand.vmem [shape: bf16[16,64], index: 0, kind: input, shape index: {}]   ;;  %s327_s3 = inlined_call_operand.vmem [shape: bf16[16,32], index: 3, kind: input, shape index: {}]   ;;  %s328_s2 = inlined_call_operand.vmem [shape: f32[1,32], index: 2, kind: input, shape index: {}, may-alias: {2,5}]   ;;  %s329_s4 = inlined_call_operand.vmem [shape: f32[1,32], index: 4, kind: input, shape index: {}]   ;;  %s330_s5 = inlined_call_operand.vmem [shape: f32[1,32], index: 5, kind: input, shape index: {}, may-alias: {2,5}]   ;;  %s331_s6 = inlined_call_operand.vmem [shape: bf16[16,32], index: 6, kind: output, shape index: {}]  }
   0x1   :  { %224 = vmatprep.subr.bf16.mxu0 %v247_v0  ;;  %v238_v1 = vld [vmem:[%s325_s1] sm:$0xff]   ;;  %232 = vmatprep.mubr.msk.bf16.mxu0 %vm248_vm1, %v247_v0  ;;  %29 = vst.msk [vmem:[#allocation2] sm:$0xff] %vm28_vm0, %v247_v0  ;;  %30 = vst.msk [vmem:[#allocation2 + $0x8] sm:$0xff] %vm28_vm0, %v247_v0  ;;  %v239_v2 = vld [vmem:[%s325_s1 + $0x8] sm:$0xff]   ;;  %vm195_vm3 = vcmask 257024  }
   0x2   :  { %225 = vmatpush3.bf16.msra.mxu0 %v238_v1  ;;  %v240_v3 = vld [vmem:[%s325_s1 + $0x10] sm:$0xff]   ;;  %v241_v4 = vld [vmem:[%s325_s1 + $0x18] sm:$0xff]   ;;  %v242_v5 = vld [vmem:[%s326_s0] sm:$0xff]  }
   0x3   :  { %226 = vmatprep.subr.bf16.mxu0 %v247_v0  ;;  %v216_v14 = vld [vmem:[%s327_s3] sm:$0xff]  }
   0x4   :  { %v208_v15 = vld [vmem:[%s328_s2] ss:$0 sm:$0xff]  ;;  %v217_v16 = vunpack.c.l.bf16 %v216_v14  ;;  %v218_v19 = vunpack.c.h.bf16 %v216_v14 }
   0x5   :  { %v209_v43 = vld [vmem:[%s329_s4] ss:$0 sm:$0xff] }
   0x6   :  { %227 = vmatpush3.bf16.msra.mxu0 %v239_v2  ;;  %v210_v45 = vld [vmem:[%s330_s5] ss:$0 sm:$0xff] }
   0x7   :  { %228 = vmatprep.subr.bf16.mxu0 %v247_v0 }
   0x8   :  { %v31_v6 = vld [vmem:[#allocation2] sm:$0xff]  ;;  %v32_v8 = vld [vmem:[#allocation2 + $0x8] sm:$0xff] }
   0xa   :  { %229 = vmatpush3.bf16.msra.mxu0 %v240_v3 }
   0xb   :  { %230 = vmatprep.subr.bf16.mxu0 %v247_v0 }
   0xe   :  { %231 = vmatpush3.bf16.msra.mxu0 %v241_v4 }
  0x11   :  { %233 = vmatmul.mubr.msk.bf16.vlgmr.msra.gmra.mrb[0].mxu0 %vm72_vm2, %v242_v5 }
  0xe4   :  { %v110_v7 = vpop.f32.mrb[0].mxu0 }
  0xe5   :  { %v117_v9 = vadd.f32 %v110_v7, %v31_v6  ;;  %v234_v10 = vpop.f32.mrb[1].mxu0 }
  0xe6   :  { %v113_v11 = vpop.f32.mrb[2].mxu0 }
  0xe7   :  { %120 = vst.msk [vmem:[#allocation2] sm:$0xff] %vm28_vm0, %v117_v9  ;;  %v118_v12 = vadd.f32 %v113_v11, %v32_v8  ;;  %v235_v13 = vpop.f32.mrb[3].mxu0 }
  0xe9   :  { %121 = vst.msk [vmem:[#allocation2 + $0x8] sm:$0xff] %vm28_vm0, %v118_v12 }
  0xee   :  { %v125_v17 = vld [vmem:[#allocation2] sm:$0xff] }
  0xef   :  { %v134_v18 = vadd.f32 %v208_v15, %v125_v17 }
  0xf0   :  { %v126_v20 = vld [vmem:[#allocation2 + $0x8] sm:$0xff] }
  0xf1   :  { %v140_v21 = vadd.f32 %v217_v16, %v134_v18  ;;  %v135_v22 = vadd.f32 %v208_v15, %v126_v20 }
  0xf3   :  { %v142_v23 = vsel %vm28_vm0, %v140_v21, 0.0  ;;  %v141_v24 = vadd.f32 %v218_v19, %v135_v22 }
  0xf4   :  { %143 = vadd.xlane.f32.xlu0 %v142_v23 }
  0xf5   :  { %v145_v25 = vsel %vm28_vm0, %v141_v24, 0.0 }
  0xf8   :  { %146 = vadd.xlane.f32.xlu0 %v145_v25 }
 0x181   :  { %v144_v26 = vpop.xlane.xlu0 %143 }
 0x182   :  { %v149_v27 = vmul.f32 0.03125, %v144_v26 }
 0x184   :  { %v151_v28 = vsub.f32 %v140_v21, %v149_v27 }
 0x185   :  { %v147_v29 = vpop.xlane.xlu0 %146 }
 0x186   :  { %v150_v30 = vmul.f32 0.03125, %v147_v29  ;;  %v153_v31 = vmul.f32 %v151_v28, %v151_v28 }
 0x188   :  { %v152_v32 = vsub.f32 %v141_v24, %v150_v30  ;;  %v155_v33 = vsel %vm28_vm0, %v153_v31, 0.0 }
 0x189   :  { %156 = vadd.xlane.f32.xlu1 %v155_v33 }
 0x18a   :  { %v154_v34 = vmul.f32 %v152_v32, %v152_v32 }
 0x18c   :  { %v158_v35 = vsel %vm28_vm0, %v154_v34, 0.0 }
 0x18d   :  { %159 = vadd.xlane.f32.xlu1 %v158_v35 }
 0x216   :  { %v157_v36 = vpop.xlane.xlu1 %156 }
 0x217   :  { %v161_v37 = vmul.f32 0.03125, %v157_v36 }
 0x219   :  { %v163_v38 = vadd.f32 1e-12, %v161_v37 }
 0x21a   :  { %v160_v39 = vpop.xlane.xlu1 %159 }
 0x21b   :  { %243 = vrsqrt.f32 %v163_v38  ;;  %v162_v40 = vmul.f32 0.03125, %v160_v39 }
 0x21d   :  { %v164_v41 = vadd.f32 1e-12, %v162_v40 }
 0x21f   :  { %245 = vrsqrt.f32 %v164_v41 }
 0x225   :  { %v244_v42 = vpop.eup %243 }
 0x226   :  { %v167_v44 = vmul.f32 %v244_v42, %v151_v28 }
 0x228   :  { %v176_v46 = vmul.f32 %v209_v43, %v167_v44 }
 0x229   :  { %v246_v47 = vpop.eup %245 }
 0x22a   :  { %v185_v48 = vadd.f32 %v210_v45, %v176_v46  ;;  %v168_v49 = vmul.f32 %v246_v47, %v152_v32 }
 0x22c   :  { %v213_v50 = vpack.c.bf16 %v185_v48, %v185_v48  ;;  %v177_v51 = vmul.f32 %v209_v43, %v168_v49 }
 0x22e   :  { %196 = vst.msk [vmem:[%s331_s6] sm:$0xf] %vm195_vm3, %v213_v50  ;;  %v186_v52 = vadd.f32 %v210_v45, %v177_v51 }
 0x230   :  { %v214_v53 = vpack.c.bf16 %v186_v52, %v186_v52 }
 0x232   :  { %197 = vst.msk [vmem:[%s331_s6 + $0x4] sm:$0xf] %vm195_vm3, %v214_v53 }

</bundles_post_ra>
